<compile_context>
chip_gen: v7x
topology: tpu7x:2x2x1
jax: 0.10.0
libtpu: 0.0.40
codegen_flags: <defaults>
</compile_context>

<pallas_src>
import functools

import numpy as np
import jax
import jax.numpy as jnp
from jax import lax
from jax.experimental import pallas as pl
from jax.experimental.pallas import tpu as pltpu

LANE = 128      # activations / per-tap conv outputs are zero-padded to this lane width
SUBLANE = 8


def _round_up(x, m):
    return (x + m - 1) // m * m


# ------------------------------ Pallas kernel ------------------------------ #

def _fused_disc_kernel(x_ref, l_ref, r_ref, out_ref, tstk_ref, *,
                       layers, num_main, slope, bias_row):
    """Whole Discriminator forward (main conv stack + conv1/conv2 heads).

    Inputs (3 DMAs total):
      x_ref : (N*H0, in_pad0)                 lane-padded input activation
      l_ref : (sum N*Ho_i, max L cols)        kh-concatenated 0/1 row-selection mats
      r_ref : (max_in_pad + 1, sum k*ncols)   kh-lane-concatenated weight mats;
                                              extra last row holds the bias rows
    Output (1 DMA): merged, padded buffer; out_real rows on top, out_aux below.
    Scratch: tstk_ref — sublane-stacked per-tap results so the row-selection
      multiply is a single matmul (2 matmuls per layer total).
    """
    act = x_ref[...]
    heads = []
    for li, m in enumerate(layers):
        k, nh, nho = m["k"], m["nh"], m["nho"]
        in_pad, ncols = m["in_pad"], m["ncols"]
        r_off, l_off = m["r_off"], m["l_off"]
        assert act.shape[1] == in_pad and act.shape[0] == nh

        # (1) ONE wide, lane-aligned right matmul covering all k vertical taps.
        t_cat = jnp.dot(act, r_ref[:in_pad, r_off:r_off + k * ncols],
                        preferred_element_type=jnp.float32)

        # (2) Sublane-stack the per-tap lane slabs (vreg-aligned value slices).
        for kh in range(k):
            tstk_ref[kh * nh:(kh + 1) * nh, :ncols] = \
                t_cat[:, kh * ncols:(kh + 1) * ncols]

        # (3) ONE left matmul with the kh-concatenated selection matrix
        #     (stride / kh offset / zero padding / per-sample blocks folded in).
        y = jnp.dot(l_ref[l_off:l_off + nho, :k * nh],
                    tstk_ref[:k * nh, :ncols],
                    preferred_element_type=jnp.float32)

        if m["has_bias"]:
            y = y + r_ref[bias_row:bias_row + 1, r_off:r_off + ncols]

        if li < num_main:
            act = jnp.maximum(y, slope * y)   # LeakyReLU; valid for 0 <= slope <= 1
        else:
            heads.append(y)                   # conv1 / conv2 heads (no bias)

    out_real, out_aux = heads
    rr, ra = out_real.shape[0], out_aux.shape[0]
    out_ref[...] = jnp.zeros_like(out_ref)    # one merged, padded output tile
    out_ref[0:rr, 0:out_real.shape[1]] = out_real
    out_ref[rr:rr + ra, 0:out_aux.shape[1]] = out_aux


# --------------------------- host-side weight pack -------------------------- #

def _pack_conv(wt, batch, h, w, stride, pad, in_pad):
    """Torch conv weight (Cout, Cin, k, k) -> kh-concatenated (L_cat, R_cat) with
         out2d = L_cat @ stack_kh( x2d @ R_cat[:, kh*ncols:(kh+1)*ncols] )
       x2d[(n*H + h), (w*Cin + ci)], out2d[(n*Ho + i), (j*Cout + co)].
    R_cat lane blocks are zero-padded to `ncols` (multiple of 128) and its rows to
    `in_pad`, so every in-kernel slice/store is lane-aligned and the next layer's
    activation stays lane-dense."""
    wt = np.asarray(wt, np.float32)
    cout, cin, k, k2 = wt.shape
    assert k == k2
    assert in_pad >= w * cin
    ho = (h + 2 * pad - k) // stride + 1
    wo = (w + 2 * pad - k) // stride + 1
    ncols = _round_up(wo * cout, LANE)
    nh, nho = batch * h, batch * ho
    L = np.zeros((nho, k * nh), np.float32)
    R = np.zeros((in_pad, k * ncols), np.float32)
    for kh in range(k):
        for n in range(batch):
            for i in range(ho):
                src = stride * i + kh - pad
                if 0 <= src < h:
                    L[n * ho + i, kh * nh + n * h + src] = 1.0
        for kw in range(k):
            for j in range(wo):
                src = stride * j + kw - pad
                if 0 <= src < w:
                    R[src * cin:(src + 1) * cin,
                      kh * ncols + j * cout:kh * ncols + (j + 1) * cout] += \
                        wt[:, :, kh, kw].T
    return L, R, ho, wo, ncols, nh, nho


def pack_params(params, batch, image_size):
    """Precompute ONCE host-side: all (L_cat, R_cat, bias) folded into two flat
    f32 slabs so the kernel issues exactly 3 input DMAs and 1 output DMA."""
    h = w = image_size
    cin0 = int(np.asarray(params["convs"][0][0]).shape[1])
    in_pad0 = _round_up(w * cin0, LANE)

    Ls, Rs, biases, metas = [], [], [], []
    flops = 0

    def add_layer(wt, bias, stride, pad, cur_h, cur_w, cur_pad):
        nonlocal flops
        L, R, ho, wo, ncols, nh, nho = _pack_conv(wt, batch, cur_h, cur_w,
                                                  stride, pad, cur_pad)
        wt_np = np.asarray(wt)
        k, cout = int(wt_np.shape[2]), int(wt_np.shape[0])
        brow = None
        if bias is not None:
            brow = np.zeros((ncols,), np.float32)
            brow[:wo * cout] = np.tile(np.asarray(bias, np.float32), wo)
        Ls.append(L); Rs.append(R); biases.append(brow)
        metas.append(dict(k=k, nh=nh, nho=nho, in_pad=cur_pad, ncols=ncols,
                          has_bias=bias is not None))
        flops += 2 * nh * cur_pad * k * ncols + 2 * nho * k * nh * ncols
        return ho, wo, ncols, cout

    cur_h, cur_w, cur_pad = h, w, in_pad0
    for (wt, b, stride) in params["convs"]:
        cur_h, cur_w, cur_pad, _ = add_layer(wt, b, stride, 1, cur_h, cur_w, cur_pad)
    num_main = len(params["convs"])
    feat_h, feat_w, feat_pad = cur_h, cur_w, cur_pad

    # conv1 head: 3x3, stride 1, pad 1, no bias   (Cout = 1)
    ho1, wo1, ncols1, cout1 = add_layer(params["conv1_w"], None, 1, 1,
                                        feat_h, feat_w, feat_pad)
    # conv2 head: k_size x k_size, stride 1, pad 0, no bias   (Cout = c_dim)
    ho2, wo2, ncols2, cout2 = add_layer(params["conv2_w"], None, 1, 0,
                                        feat_h, feat_w, feat_pad)
    assert ho2 == 1 and wo2 == 1, "conv2 kernel must match the feature-map size"

    # --- R slab: every R_cat lane-concatenated; extra last row = bias rows ---
    max_in = max(m["in_pad"] for m in metas)
    r_widths = [m["k"] * m["ncols"] for m in metas]
    r_offs = np.concatenate([[0], np.cumsum(r_widths)]).astype(int)
    R_slab = np.zeros((max_in + 1, int(r_offs[-1])), np.float32)
    for i, (R, m) in enumerate(zip(Rs, metas)):
        m["r_off"] = int(r_offs[i])
        R_slab[:m["in_pad"], r_offs[i]:r_offs[i] + r_widths[i]] = R
        if biases[i] is not None:
            R_slab[max_in, r_offs[i]:r_offs[i] + m["ncols"]] = biases[i]

    # --- L slab: every L_cat row-concatenated (columns zero-padded to the max) ---
    max_lcols = max(m["k"] * m["nh"] for m in metas)
    l_rows = [m["nho"] for m in metas]
    l_offs = np.concatenate([[0], np.cumsum(l_rows)]).astype(int)
    L_slab = np.zeros((int(l_offs[-1]), max_lcols), np.float32)
    for i, (L, m) in enumerate(zip(Ls, metas)):
        m["l_off"] = int(l_offs[i])
        L_slab[l_offs[i]:l_offs[i] + m["nho"], :m["k"] * m["nh"]] = L

    # --- merged output buffer layout (sublane/lane padded) ---
    rows_real, rows_aux = metas[num_main]["nho"], metas[num_main + 1]["nho"]
    out_rows = _round_up(rows_real + rows_aux, SUBLANE)
    out_lane = max(ncols1, ncols2)

    stack_rows = max(m["k"] * m["nh"] for m in metas)
    stack_cols = max(m["ncols"] for m in metas)

    x_bytes = batch * h * in_pad0 * 4
    total_bytes = int(x_bytes + L_slab.nbytes + R_slab.nbytes + out_rows * out_lane * 4)
    vmem_limit = int(2 * total_bytes + stack_rows * stack_cols * 4 + (4 << 20))

    meta = dict(in_pad0=in_pad0, num_main=num_main, bias_row=max_in,
                rows_real=rows_real, rows_aux=rows_aux,
                out_rows=out_rows, out_lane=out_lane,
                real_cols=wo1 * cout1, c_dim=cout2,
                stack_rows=stack_rows, stack_cols=stack_cols,
                flops=int(flops), bytes=total_bytes, vmem_limit=vmem_limit)
    return dict(L_slab=jnp.asarray(L_slab), R_slab=jnp.asarray(R_slab),
                layers=tuple(metas), meta=meta)


# --------------------------------- forward ---------------------------------- #

def discriminator_forward(x_nchw, packed, slope=0.1):
    """Pallas implementation of Discriminator.forward (classify_branch == 1).

    Returns (out_real.view(N, -1), out_aux.squeeze()) like the PyTorch module.
    NOTE: like torch .squeeze(), out_aux also drops the batch dim when N == 1.
    """
    n, c, h, w = x_nchw.shape
    meta = packed["meta"]
    # TODO(synk): at production sizes fold this relayout/pad into the first
    # layer's packed R instead of a separate transpose in front of the kernel.
    x2d = jnp.transpose(x_nchw, (0, 2, 3, 1)).reshape(n * h, w * c).astype(jnp.float32)
    x2d = jnp.pad(x2d, ((0, 0), (0, meta["in_pad0"] - w * c)))

    kernel = functools.partial(
        _fused_disc_kernel, layers=packed["layers"], num_main=meta["num_main"],
        slope=slope, bias_row=meta["bias_row"])
    vmem = pl.BlockSpec(memory_space=pltpu.MemorySpace.VMEM)

    out2d = pl.pallas_call(
        kernel,
        out_shape=jax.ShapeDtypeStruct((meta["out_rows"], meta["out_lane"]),
                                       jnp.float32),
        in_specs=[vmem, vmem, vmem],
        out_specs=vmem,
        scratch_shapes=[pltpu.VMEM((meta["stack_rows"], meta["stack_cols"]),
                                   jnp.float32)],
        compiler_params=pltpu.CompilerParams(vmem_limit_bytes=meta["vmem_limit"]),
        cost_estimate=pl.CostEstimate(flops=meta["flops"], transcendentals=0,
                                      bytes_accessed=meta["bytes"]),
    )(x2d, packed["L_slab"], packed["R_slab"])

    rr, ra = meta["rows_real"], meta["rows_aux"]
    out_real = out2d[:rr, :meta["real_cols"]].reshape(n, -1)        # == .view(N, -1)
    out_aux = out2d[rr:rr + ra, :meta["c_dim"]]
    out_aux = jnp.squeeze(out_aux.reshape(n, meta["c_dim"], 1, 1))  # torch .squeeze()
    return out_real, out_aux


# ------------------------- pure-JAX reference check ------------------------- #

def ref_forward(x, params, slope=0.1):
    conv = functools.partial(lax.conv_general_dilated,
                             dimension_numbers=("NCHW", "OIHW", "NCHW"),
                             precision=lax.Precision.HIGHEST)
    h = x.astype(jnp.float32)
    for (wt, b, stride) in params["convs"]:
        h = conv(h, wt, window_strides=(stride, stride), padding=((1, 1), (1, 1)))
        h = h + b.reshape(1, -1, 1, 1)
        h = jnp.maximum(h, slope * h)
    out_real = conv(h, params["conv1_w"], window_strides=(1, 1), padding=((1, 1), (1, 1)))
    out_aux = conv(h, params["conv2_w"], window_strides=(1, 1), padding=((0, 0), (0, 0)))
    return out_real.reshape(x.shape[0], -1), jnp.squeeze(out_aux)


# ----------------------------------- main ----------------------------------- #

if __name__ == "__main__":
    # Small config consistent with the module:
    #   Discriminator(image_size=16, conv_dim=8, c_dim=5, repeat_num=3,
    #                 init_stride=2, classify_branch=1, nc=3, d_kernel_size=4,
    #                 patch_size=2, use_bnorm=False, use_tv_inp=0)
    # TODO(synk): use_tv_inp (replicate-pad TV conv), use_bnorm (BatchNorm2d) and
    # classify_branch==2 (label-embedding) branches are off in this default
    # config and are not implemented.
    image_size, conv_dim, c_dim, repeat_num = 16, 8, 5, 3
    init_stride, patch_size, nc, dkz = 2, 2, 3, 4
    batch = 2

    n_downsamp = int(np.log2(image_size // patch_size))
    k_size = int(image_size / 2 ** repeat_num) + 2 - init_stride

    keys = iter(jax.random.split(jax.random.PRNGKey(0), 2 * repeat_num + 3))

    convs = []
    w0 = 0.05 * jax.random.normal(next(keys), (conv_dim, nc, dkz, dkz), jnp.float32)
    b0 = 0.05 * jax.random.normal(next(keys), (conv_dim,), jnp.float32)
    convs.append((w0, b0, init_stride))
    curr = conv_dim
    for i in range(1, repeat_num):
        out_dim = curr * 2
        stride = 1 if i >= n_downsamp else 2
        wi = 0.05 * jax.random.normal(next(keys), (out_dim, curr, dkz, dkz), jnp.float32)
        bi = 0.05 * jax.random.normal(next(keys), (out_dim,), jnp.float32)
        convs.append((wi, bi, stride))
        curr = out_dim

    conv1_w = 0.05 * jax.random.normal(next(keys), (1, curr, 3, 3), jnp.float32)
    conv2_w = 0.05 * jax.random.normal(next(keys), (c_dim, curr, k_size, k_size),
                                       jnp.float32)
    params = {"convs": convs, "conv1_w": conv1_w, "conv2_w": conv2_w}

    x = jax.random.normal(next(keys), (batch, nc, image_size, image_size), jnp.float32)

    packed = pack_params(params, batch, image_size)           # pack weights ONCE
    fwd = jax.jit(lambda inp: discriminator_forward(inp, packed, slope=0.1))

    out_real, out_aux = jax.block_until_ready(fwd(x))
    ref_real, ref_aux = jax.block_until_ready(ref_forward(x, params, slope=0.1))

    hf = image_size // (2 ** repeat_num)
    assert out_real.shape == ref_real.shape == (batch, hf * hf), (out_real.shape, ref_real.shape)
    assert out_aux.shape == ref_aux.shape == (batch, c_dim), (out_aux.shape, ref_aux.shape)
    assert jnp.allclose(out_real, ref_real, rtol=1e-3, atol=1e-4), "out_real mismatch"
    assert jnp.allclose(out_aux, ref_aux, rtol=1e-3, atol=1e-4), "out_aux mismatch"
    print("KERNEL_OK")
</pallas_src>

<mosaic_0001>
module attributes {stable_mosaic.version = 11 : i64} {
  func.func @_fused_disc_kernel(%arg0: memref<32x128xf32, #tpu.memory_space<vmem>>, %arg1: memref<34x128xf32, #tpu.memory_space<vmem>>, %arg2: memref<129x2176xf32, #tpu.memory_space<vmem>>, %arg3: memref<8x128xf32, #tpu.memory_space<vmem>>, %arg4: memref<128x128xf32, #tpu.memory_space<vmem>>) attributes {dimension_semantics = [], scalar_prefetch = 0 : i64, scratch_operands = 1 : i64, tpu.core_type = #tpu.core_type<tc>} {
    %c0 = arith.constant 0 : index
    %c0_0 = arith.constant 0 : index
    %0 = vector.load %arg0[%c0, %c0_0] : memref<32x128xf32, #tpu.memory_space<vmem>>, vector<32x128xf32>
    %c0_1 = arith.constant 0 : index
    %c0_2 = arith.constant 0 : index
    %1 = vector.load %arg2[%c0_1, %c0_2] : memref<129x2176xf32, #tpu.memory_space<vmem>>, vector<128x512xf32>
    %cst = arith.constant dense<0.000000e+00> : vector<32x512xf32>
    %2 = tpu.matmul %0, %1, %cst {dimension_numbers = #tpu.dot_dimension_numbers<[1], [0], [0], [1], [0, 0, 1, 1], [], []>} : vector<32x128xf32>, vector<128x512xf32>, vector<32x512xf32> -> vector<32x512xf32>
    %3 = vector.extract_strided_slice %2 {offsets = [0, 0], sizes = [32, 128], strides = [1, 1]} : vector<32x512xf32> to vector<32x128xf32>
    %c0_3 = arith.constant 0 : index
    %c0_4 = arith.constant 0 : index
    %4 = vector.load %arg4[%c0_3, %c0_4] : memref<128x128xf32, #tpu.memory_space<vmem>>, vector<32x128xf32>
    tpu.vector_store %arg4[%c0_3, %c0_4], %3 {strides = array<i32>} : memref<128x128xf32, #tpu.memory_space<vmem>>, vector<32x128xf32>,
    %5 = vector.extract_strided_slice %2 {offsets = [0, 128], sizes = [32, 128], strides = [1, 1]} : vector<32x512xf32> to vector<32x128xf32>
    %c32 = arith.constant 32 : index
    %c0_5 = arith.constant 0 : index
    %6 = vector.load %arg4[%c32, %c0_5] : memref<128x128xf32, #tpu.memory_space<vmem>>, vector<32x128xf32>
    tpu.vector_store %arg4[%c32, %c0_5], %5 {strides = array<i32>} : memref<128x128xf32, #tpu.memory_space<vmem>>, vector<32x128xf32>,
    %7 = vector.extract_strided_slice %2 {offsets = [0, 256], sizes = [32, 128], strides = [1, 1]} : vector<32x512xf32> to vector<32x128xf32>
    %c64 = arith.constant 64 : index
    %c0_6 = arith.constant 0 : index
    %8 = vector.load %arg4[%c64, %c0_6] : memref<128x128xf32, #tpu.memory_space<vmem>>, vector<32x128xf32>
    tpu.vector_store %arg4[%c64, %c0_6], %7 {strides = array<i32>} : memref<128x128xf32, #tpu.memory_space<vmem>>, vector<32x128xf32>,
    %9 = vector.extract_strided_slice %2 {offsets = [0, 384], sizes = [32, 128], strides = [1, 1]} : vector<32x512xf32> to vector<32x128xf32>
    %c96 = arith.constant 96 : index
    %c0_7 = arith.constant 0 : index
    %10 = vector.load %arg4[%c96, %c0_7] : memref<128x128xf32, #tpu.memory_space<vmem>>, vector<32x128xf32>
    tpu.vector_store %arg4[%c96, %c0_7], %9 {strides = array<i32>} : memref<128x128xf32, #tpu.memory_space<vmem>>, vector<32x128xf32>,
    %c0_8 = arith.constant 0 : index
    %c0_9 = arith.constant 0 : index
    %11 = vector.load %arg1[%c0_8, %c0_9] : memref<34x128xf32, #tpu.memory_space<vmem>>, vector<16x128xf32>
    %c0_10 = arith.constant 0 : index
    %c0_11 = arith.constant 0 : index
    %12 = vector.load %arg4[%c0_10, %c0_11] : memref<128x128xf32, #tpu.memory_space<vmem>>, vector<128x128xf32>
    %cst_12 = arith.constant dense<0.000000e+00> : vector<16x128xf32>
    %13 = tpu.matmul %11, %12, %cst_12 {dimension_numbers = #tpu.dot_dimension_numbers<[1], [0], [0], [1], [0, 0, 1, 1], [], []>} : vector<16x128xf32>, vector<128x128xf32>, vector<16x128xf32> -> vector<16x128xf32>
    %c128 = arith.constant 128 : index
    %c0_13 = arith.constant 0 : index
    %14 = vector.load %arg2[%c128, %c0_13] : memref<129x2176xf32, #tpu.memory_space<vmem>>, vector<1x128xf32>
    %15 = vector.broadcast %14 : vector<1x128xf32> to vector<16x128xf32>
    %16 = arith.addf %13, %15 : vector<16x128xf32>
    %cst_14 = arith.constant 1.000000e-01 : f32
    %17 = vector.broadcast %cst_14 : f32 to vector<16x128xf32>
    %18 = arith.mulf %17, %16 : vector<16x128xf32>
    %19 = arith.maximumf %16, %18 : vector<16x128xf32>
    %c0_15 = arith.constant 0 : index
    %c512 = arith.constant 512 : index
    %20 = vector.load %arg2[%c0_15, %c512] : memref<129x2176xf32, #tpu.memory_space<vmem>>, vector<128x512xf32>
    %cst_16 = arith.constant dense<0.000000e+00> : vector<16x512xf32>
    %21 = tpu.matmul %19, %20, %cst_16 {dimension_numbers = #tpu.dot_dimension_numbers<[1], [0], [0], [1], [0, 0, 1, 1], [], []>} : vector<16x128xf32>, vector<128x512xf32>, vector<16x512xf32> -> vector<16x512xf32>
    %22 = vector.extract_strided_slice %21 {offsets = [0, 0], sizes = [16, 128], strides = [1, 1]} : vector<16x512xf32> to vector<16x128xf32>
    %c0_17 = arith.constant 0 : index
    %c0_18 = arith.constant 0 : index
    %23 = vector.load %arg4[%c0_17, %c0_18] : memref<128x128xf32, #tpu.memory_space<vmem>>, vector<16x128xf32>
    tpu.vector_store %arg4[%c0_17, %c0_18], %22 {strides = array<i32>} : memref<128x128xf32, #tpu.memory_space<vmem>>, vector<16x128xf32>,
    %24 = vector.extract_strided_slice %21 {offsets = [0, 128], sizes = [16, 128], strides = [1, 1]} : vector<16x512xf32> to vector<16x128xf32>
    %c16 = arith.constant 16 : index
    %c0_19 = arith.constant 0 : index
    %25 = vector.load %arg4[%c16, %c0_19] : memref<128x128xf32, #tpu.memory_space<vmem>>, vector<16x128xf32>
    tpu.vector_store %arg4[%c16, %c0_19], %24 {strides = array<i32>} : memref<128x128xf32, #tpu.memory_space<vmem>>, vector<16x128xf32>,
    %26 = vector.extract_strided_slice %21 {offsets = [0, 256], sizes = [16, 128], strides = [1, 1]} : vector<16x512xf32> to vector<16x128xf32>
    %c32_20 = arith.constant 32 : index
    %c0_21 = arith.constant 0 : index
    %27 = vector.load %arg4[%c32_20, %c0_21] : memref<128x128xf32, #tpu.memory_space<vmem>>, vector<16x128xf32>
    tpu.vector_store %arg4[%c32_20, %c0_21], %26 {strides = array<i32>} : memref<128x128xf32, #tpu.memory_space<vmem>>, vector<16x128xf32>,
    %28 = vector.extract_strided_slice %21 {offsets = [0, 384], sizes = [16, 128], strides = [1, 1]} : vector<16x512xf32> to vector<16x128xf32>
    %c48 = arith.constant 48 : index
    %c0_22 = arith.constant 0 : index
    %29 = vector.load %arg4[%c48, %c0_22] : memref<128x128xf32, #tpu.memory_space<vmem>>, vector<16x128xf32>
    tpu.vector_store %arg4[%c48, %c0_22], %28 {strides = array<i32>} : memref<128x128xf32, #tpu.memory_space<vmem>>, vector<16x128xf32>,
    %c16_23 = arith.constant 16 : index
    %c0_24 = arith.constant 0 : index
    %30 = vector.load %arg1[%c16_23, %c0_24] : memref<34x128xf32, #tpu.memory_space<vmem>>, vector<8x64xf32>
    %c0_25 = arith.constant 0 : index
    %c0_26 = arith.constant 0 : index
    %31 = vector.load %arg4[%c0_25, %c0_26] : memref<128x128xf32, #tpu.memory_space<vmem>>, vector<64x128xf32>
    %cst_27 = arith.constant dense<0.000000e+00> : vector<8x128xf32>
    %32 = tpu.matmul %30, %31, %cst_27 {dimension_numbers = #tpu.dot_dimension_numbers<[1], [0], [0], [1], [0, 0, 1, 1], [], []>} : vector<8x64xf32>, vector<64x128xf32>, vector<8x128xf32> -> vector<8x128xf32>
    %c128_28 = arith.constant 128 : index
    %c512_29 = arith.constant 512 : index
    %33 = vector.load %arg2[%c128_28, %c512_29] : memref<129x2176xf32, #tpu.memory_space<vmem>>, vector<1x128xf32>
    %34 = vector.broadcast %33 : vector<1x128xf32> to vector<8x128xf32>
    %35 = arith.addf %32, %34 : vector<8x128xf32>
    %cst_30 = arith.constant 1.000000e-01 : f32
    %36 = vector.broadcast %cst_30 : f32 to vector<8x128xf32>
    %37 = arith.mulf %36, %35 : vector<8x128xf32>
    %38 = arith.maximumf %35, %37 : vector<8x128xf32>
    %c0_31 = arith.constant 0 : index
    %c1024 = arith.constant 1024 : index
    %39 = vector.load %arg2[%c0_31, %c1024] : memref<129x2176xf32, #tpu.memory_space<vmem>>, vector<128x512xf32>
    %cst_32 = arith.constant dense<0.000000e+00> : vector<8x512xf32>
    %40 = tpu.matmul %38, %39, %cst_32 {dimension_numbers = #tpu.dot_dimension_numbers<[1], [0], [0], [1], [0, 0, 1, 1], [], []>} : vector<8x128xf32>, vector<128x512xf32>, vector<8x512xf32> -> vector<8x512xf32>
    %41 = vector.extract_strided_slice %40 {offsets = [0, 0], sizes = [8, 128], strides = [1, 1]} : vector<8x512xf32> to vector<8x128xf32>
    %c0_33 = arith.constant 0 : index
    %c0_34 = arith.constant 0 : index
    %42 = vector.load %arg4[%c0_33, %c0_34] : memref<128x128xf32, #tpu.memory_space<vmem>>, vector<8x128xf32>
    tpu.vector_store %arg4[%c0_33, %c0_34], %41 {strides = array<i32>} : memref<128x128xf32, #tpu.memory_space<vmem>>, vector<8x128xf32>,
    %43 = vector.extract_strided_slice %40 {offsets = [0, 128], sizes = [8, 128], strides = [1, 1]} : vector<8x512xf32> to vector<8x128xf32>
    %c8 = arith.constant 8 : index
    %c0_35 = arith.constant 0 : index
    %44 = vector.load %arg4[%c8, %c0_35] : memref<128x128xf32, #tpu.memory_space<vmem>>, vector<8x128xf32>
    tpu.vector_store %arg4[%c8, %c0_35], %43 {strides = array<i32>} : memref<128x128xf32, #tpu.memory_space<vmem>>, vector<8x128xf32>,
    %45 = vector.extract_strided_slice %40 {offsets = [0, 256], sizes = [8, 128], strides = [1, 1]} : vector<8x512xf32> to vector<8x128xf32>
    %c16_36 = arith.constant 16 : index
    %c0_37 = arith.constant 0 : index
    %46 = vector.load %arg4[%c16_36, %c0_37] : memref<128x128xf32, #tpu.memory_space<vmem>>, vector<8x128xf32>
    tpu.vector_store %arg4[%c16_36, %c0_37], %45 {strides = array<i32>} : memref<128x128xf32, #tpu.memory_space<vmem>>, vector<8x128xf32>,
    %47 = vector.extract_strided_slice %40 {offsets = [0, 384], sizes = [8, 128], strides = [1, 1]} : vector<8x512xf32> to vector<8x128xf32>
    %c24 = arith.constant 24 : index
    %c0_38 = arith.constant 0 : index
    %48 = vector.load %arg4[%c24, %c0_38] : memref<128x128xf32, #tpu.memory_space<vmem>>, vector<8x128xf32>
    tpu.vector_store %arg4[%c24, %c0_38], %47 {strides = array<i32>} : memref<128x128xf32, #tpu.memory_space<vmem>>, vector<8x128xf32>,
    %c24_39 = arith.constant 24 : index
    %c0_40 = arith.constant 0 : index
    %49 = vector.load %arg1[%c24_39, %c0_40] : memref<34x128xf32, #tpu.memory_space<vmem>>, vector<4x32xf32>
    %c0_41 = arith.constant 0 : index
    %c0_42 = arith.constant 0 : index
    %50 = vector.load %arg4[%c0_41, %c0_42] : memref<128x128xf32, #tpu.memory_space<vmem>>, vector<32x128xf32>
    %cst_43 = arith.constant dense<0.000000e+00> : vector<4x128xf32>
    %51 = tpu.matmul %49, %50, %cst_43 {dimension_numbers = #tpu.dot_dimension_numbers<[1], [0], [0], [1], [0, 0, 1, 1], [], []>} : vector<4x32xf32>, vector<32x128xf32>, vector<4x128xf32> -> vector<4x128xf32>
    %c128_44 = arith.constant 128 : index
    %c1024_45 = arith.constant 1024 : index
    %52 = vector.load %arg2[%c128_44, %c1024_45] : memref<129x2176xf32, #tpu.memory_space<vmem>>, vector<1x128xf32>
    %53 = vector.broadcast %52 : vector<1x128xf32> to vector<4x128xf32>
    %54 = arith.addf %51, %53 : vector<4x128xf32>
    %cst_46 = arith.constant 1.000000e-01 : f32
    %55 = vector.broadcast %cst_46 : f32 to vector<4x128xf32>
    %56 = arith.mulf %55, %54 : vector<4x128xf32>
    %57 = arith.maximumf %54, %56 : vector<4x128xf32>
    %c0_47 = arith.constant 0 : index
    %c1536 = arith.constant 1536 : index
    %58 = vector.load %arg2[%c0_47, %c1536] : memref<129x2176xf32, #tpu.memory_space<vmem>>, vector<128x384xf32>
    %cst_48 = arith.constant dense<0.000000e+00> : vector<4x384xf32>
    %59 = tpu.matmul %57, %58, %cst_48 {dimension_numbers = #tpu.dot_dimension_numbers<[1], [0], [0], [1], [0, 0, 1, 1], [], []>} : vector<4x128xf32>, vector<128x384xf32>, vector<4x384xf32> -> vector<4x384xf32>
    %60 = vector.extract_strided_slice %59 {offsets = [0, 0], sizes = [4, 128], strides = [1, 1]} : vector<4x384xf32> to vector<4x128xf32>
    %c0_49 = arith.constant 0 : index
    %c0_50 = arith.constant 0 : index
    %61 = vector.load %arg4[%c0_49, %c0_50] : memref<128x128xf32, #tpu.memory_space<vmem>>, vector<4x128xf32>
    tpu.vector_store %arg4[%c0_49, %c0_50], %60 {strides = array<i32>} : memref<128x128xf32, #tpu.memory_space<vmem>>, vector<4x128xf32>,
    %62 = vector.extract_strided_slice %59 {offsets = [0, 128], sizes = [4, 128], strides = [1, 1]} : vector<4x384xf32> to vector<4x128xf32>
    %c4 = arith.constant 4 : index
    %c0_51 = arith.constant 0 : index
    %63 = vector.load %arg4[%c4, %c0_51] : memref<128x128xf32, #tpu.memory_space<vmem>>, vector<4x128xf32>
    tpu.vector_store %arg4[%c4, %c0_51], %62 {strides = array<i32>} : memref<128x128xf32, #tpu.memory_space<vmem>>, vector<4x128xf32>,
    %64 = vector.extract_strided_slice %59 {offsets = [0, 256], sizes = [4, 128], strides = [1, 1]} : vector<4x384xf32> to vector<4x128xf32>
    %c8_52 = arith.constant 8 : index
    %c0_53 = arith.constant 0 : index
    %65 = vector.load %arg4[%c8_52, %c0_53] : memref<128x128xf32, #tpu.memory_space<vmem>>, vector<4x128xf32>
    tpu.vector_store %arg4[%c8_52, %c0_53], %64 {strides = array<i32>} : memref<128x128xf32, #tpu.memory_space<vmem>>, vector<4x128xf32>,
    %c28 = arith.constant 28 : index
    %c0_54 = arith.constant 0 : index
    %66 = vector.load %arg1[%c28, %c0_54] : memref<34x128xf32, #tpu.memory_space<vmem>>, vector<4x12xf32>
    %c0_55 = arith.constant 0 : index
    %c0_56 = arith.constant 0 : index
    %67 = vector.load %arg4[%c0_55, %c0_56] : memref<128x128xf32, #tpu.memory_space<vmem>>, vector<12x128xf32>
    %cst_57 = arith.constant dense<0.000000e+00> : vector<4x128xf32>
    %68 = tpu.matmul %66, %67, %cst_57 {dimension_numbers = #tpu.dot_dimension_numbers<[1], [0], [0], [1], [0, 0, 1, 1], [], []>} : vector<4x12xf32>, vector<12x128xf32>, vector<4x128xf32> -> vector<4x128xf32>
    %c0_58 = arith.constant 0 : index
    %c1920 = arith.constant 1920 : index
    %69 = vector.load %arg2[%c0_58, %c1920] : memref<129x2176xf32, #tpu.memory_space<vmem>>, vector<128x256xf32>
    %cst_59 = arith.constant dense<0.000000e+00> : vector<4x256xf32>
    %70 = tpu.matmul %57, %69, %cst_59 {dimension_numbers = #tpu.dot_dimension_numbers<[1], [0], [0], [1], [0, 0, 1, 1], [], []>} : vector<4x128xf32>, vector<128x256xf32>, vector<4x256xf32> -> vector<4x256xf32>
    %71 = vector.extract_strided_slice %70 {offsets = [0, 0], sizes = [4, 128], strides = [1, 1]} : vector<4x256xf32> to vector<4x128xf32>
    %c0_60 = arith.constant 0 : index
    %c0_61 = arith.constant 0 : index
    %72 = vector.load %arg4[%c0_60, %c0_61] : memref<128x128xf32, #tpu.memory_space<vmem>>, vector<4x128xf32>
    tpu.vector_store %arg4[%c0_60, %c0_61], %71 {strides = array<i32>} : memref<128x128xf32, #tpu.memory_space<vmem>>, vector<4x128xf32>,
    %73 = vector.extract_strided_slice %70 {offsets = [0, 128], sizes = [4, 128], strides = [1, 1]} : vector<4x256xf32> to vector<4x128xf32>
    %c4_62 = arith.constant 4 : index
    %c0_63 = arith.constant 0 : index
    %74 = vector.load %arg4[%c4_62, %c0_63] : memref<128x128xf32, #tpu.memory_space<vmem>>, vector<4x128xf32>
    tpu.vector_store %arg4[%c4_62, %c0_63], %73 {strides = array<i32>} : memref<128x128xf32, #tpu.memory_space<vmem>>, vector<4x128xf32>,
    %c32_64 = arith.constant 32 : index
    %c0_65 = arith.constant 0 : index
    %75 = vector.load %arg1[%c32_64, %c0_65] : memref<34x128xf32, #tpu.memory_space<vmem>>, vector<2x8xf32>
    %c0_66 = arith.constant 0 : index
    %c0_67 = arith.constant 0 : index
    %76 = vector.load %arg4[%c0_66, %c0_67] : memref<128x128xf32, #tpu.memory_space<vmem>>, vector<8x128xf32>
    %cst_68 = arith.constant dense<0.000000e+00> : vector<2x128xf32>
    %77 = tpu.matmul %75, %76, %cst_68 {dimension_numbers = #tpu.dot_dimension_numbers<[1], [0], [0], [1], [0, 0, 1, 1], [], []>} : vector<2x8xf32>, vector<8x128xf32>, vector<2x128xf32> -> vector<2x128xf32>
    %cst_69 = arith.constant 0.000000e+00 : f32
    %78 = vector.broadcast %cst_69 : f32 to vector<8x128xf32>
    %c0_70 = arith.constant 0 : index
    %c0_71 = arith.constant 0 : index
    %79 = vector.load %arg3[%c0_70, %c0_71] : memref<8x128xf32, #tpu.memory_space<vmem>>, vector<8x128xf32>
    tpu.vector_store %arg3[%c0_70, %c0_71], %78 {strides = array<i32>} : memref<8x128xf32, #tpu.memory_space<vmem>>, vector<8x128xf32>,
    %c0_72 = arith.constant 0 : index
    %c0_73 = arith.constant 0 : index
    %80 = vector.load %arg3[%c0_72, %c0_73] : memref<8x128xf32, #tpu.memory_space<vmem>>, vector<4x128xf32>
    tpu.vector_store %arg3[%c0_72, %c0_73], %68 {strides = array<i32>} : memref<8x128xf32, #tpu.memory_space<vmem>>, vector<4x128xf32>,
    %c4_74 = arith.constant 4 : index
    %c0_75 = arith.constant 0 : index
    %81 = vector.load %arg3[%c4_74, %c0_75] : memref<8x128xf32, #tpu.memory_space<vmem>>, vector<2x128xf32>
    tpu.vector_store %arg3[%c4_74, %c0_75], %77 {strides = array<i32>} : memref<8x128xf32, #tpu.memory_space<vmem>>, vector<2x128xf32>,
    return
  }
}

</mosaic_0001>

<bundles_post_ra>
// kernel: _lambda_.1
= control target key start
LH: loop header
LB: loop body
LE: loop exit
PB: predicated region body
PF: predicated region fallthrough
CT: control target
= control target key end

     0   :  { %8 = vsyncpa [#allocation4], 0  ;;  %s2161_s0 = inlined_call_operand.vmem [shape: f32[32,128], index: 0, kind: input, shape index: {}]   ;;  %s2162_s1 = inlined_call_operand.hbm [shape: f32[34,128], index: 1, kind: input, shape index: {}]   ;;  %s2163_s2 = inlined_call_operand.hbm [shape: f32[129,2176], index: 2, kind: input, shape index: {}]   ;;  %s2164_s3 = inlined_call_operand.vmem [shape: f32[8,128], index: 3, kind: output, shape index: {}]  }
   0x1   :  { %9 = vsyncpa [#allocation6], 0  ;;  %s2033_s12 = smov [#allocation3]   ;;  %s1985_s16 = scalar_lea.hbm %s2162_s1, 640 }
   0x2   :  { %s17_s13 = sshll.u32 %s2033_s12, 4  ;;  %p1986_p0 = scmp.ne.s32.totalorder %s2162_s1, %s1985_s16  ;;  %s18_s13 = int_to_ptr.vmem [resolvable:$true] %s17_s13 }
   0x3   :  { %p1989_p1 = scmp.lt.u32.totalorder %s1985_s16, %s2162_s1 }
   0x5   :  { %p1991_p2 = pnand %p1989_p1, %p1986_p0 }
   0x7   :  { %1994 = shalt.err (!%p1991_p2)
}
   0x8   :  { %s1995_s21 = scalar_lea.vmem %s18_s13, 640  ;;  %p2000_p4 = scmp.lt.s32.totalorder %s18_s13, %s18_s13 }
   0x9   :  { %p1996_p3 = scmp.ne.s32.totalorder %s18_s13, %s1995_s21  ;;  %p2001_p5 = scmp.lt.s32.totalorder %s1995_s21, %s1995_s21 }
   0xb   :  { %p2002_p6 = por %p2001_p5, %p2000_p4 }
   0xd   :  { %p2003_p7 = pnand %p2002_p6, %p1996_p3 }
   0xf   :  { %2006 = shalt.err (!%p2003_p7)
}
  0x10   :  { %s2034_s22 = smov 128   ;;  %s2035_s23 = smov 8  }
  0x11   :  { %23 = dma.hbm_to_vmem [thread:$0]  %s2162_s1, 640, %s18_s13, [#allocation4], %s2034_s22, %s2034_s22, %s2035_s23  }
  0x12   :  { %s2036_s26 = smov [#allocation5]   ;;  %s2007_s30 = scalar_lea.hbm %s2163_s2, 36992 }
  0x13   :  { %s29_s27 = sshll.u32 %s2036_s26, 4  ;;  %p2008_p8 = scmp.ne.s32.totalorder %s2163_s2, %s2007_s30  ;;  %s30_s27 = int_to_ptr.vmem [resolvable:$true] %s29_s27 }
  0x14   :  { %p2011_p9 = scmp.lt.u32.totalorder %s2007_s30, %s2163_s2 }
  0x16   :  { %p2013_p10 = pnand %p2011_p9, %p2008_p8 }
  0x18   :  { %2016 = shalt.err (!%p2013_p10)
}
  0x19   :  { %s2017_s8 = scalar_lea.vmem %s30_s27, 36992  ;;  %p2022_p12 = scmp.lt.s32.totalorder %s30_s27, %s30_s27 }
  0x1a   :  { %p2018_p11 = scmp.ne.s32.totalorder %s30_s27, %s2017_s8  ;;  %p2023_p13 = scmp.lt.s32.totalorder %s2017_s8, %s2017_s8 }
  0x1c   :  { %p2024_p0 = por %p2023_p13, %p2022_p12 }
  0x1e   :  { %p2025_p1 = pnand %p2024_p0, %p2018_p11 }
  0x20   :  { %2028 = shalt.err (!%p2025_p1)
}
  0x21   :  { %s2037_s1 = smov 2176   ;;  %s2038_s9 = smov 136  }
  0x22   :  { %35 = dma.hbm_to_vmem [thread:$0]  %s2163_s2, 36992, %s30_s27, [#allocation6], %s2037_s1, %s2037_s1, %s2038_s9  }
  0x23   :  { %2029 = dma.done.wait [#allocation4], 640  }
  0x24   :  { %2030 = vsyncadd [#allocation4], 4294966656 }
  0x25   :  { %2031 = dma.done.wait [#allocation6], 36992  }
  0x26   :  { %2032 = vsyncadd [#allocation6], 4294930304  ;;  %v2039_v0 = vmov 0.0   ;;  %v47_v1 = vld [vmem:[#allocation5 + $0x8] sm:$0xff]  ;;  %v51_v2 = vld [vmem:[#allocation5 + $0x90] sm:$0xff]  ;;  %vm2041_vm0 = vmmov 0  }
  0x27   :  { %174 = vmatprep.mubr.f32.mxu0 %v2039_v0  ;;  %1460 = vst [vmem:[%s2164_s3] sm:$0xff] %v2039_v0  ;;  %263 = vmatprep.mubr.f32.mxu1 %v2039_v0  ;;  %v46_v3 = vld [vmem:[#allocation5] sm:$0xff]  ;;  %v1640_v4 = vpack.c.bf16 %v51_v2, %v47_v1  ;;  %v50_v5 = vld [vmem:[#allocation5 + $0x88] sm:$0xff]  ;;  %v55_v6 = vld [vmem:[#allocation5 + $0x118] sm:$0xff]  ;;  %vm638_vm1 = vcmask 523264   ;;  %vm930_vm2 = vcmask 261120   ;;  %vm1205_vm3 = vcmask 1043456  }
  0x28   :  { %v59_v7 = vld [vmem:[#allocation5 + $0x1a0] sm:$0xff]  ;;  %v1642_v8 = vpack.c.bf16 %v50_v5, %v46_v3  ;;  %v54_v10 = vld [vmem:[#allocation5 + $0x110] sm:$0xff]  ;;  %v58_v11 = vld [vmem:[#allocation5 + $0x198] sm:$0xff]  ;;  %vm2042_vm4 = vmmov 1   ;;  %vm1201_vm6 = vcmask 97280   ;;  %vm1386_vm7 = vcmask 64512  }
  0x29   :  { %v1644_v9 = vpack.c.bf16 %v59_v7, %v55_v6  ;;  %v63_v12 = vld [vmem:[#allocation5 + $0x228] sm:$0xff]  ;;  %1641 = vmatprep.subr.bf16.mxu0 %v1640_v4  ;;  %v67_v13 = vld [vmem:[#allocation5 + $0x2b0] sm:$0xff]  ;;  %v1646_v14 = vpack.c.bf16 %v58_v11, %v54_v10  ;;  %v62_v15 = vld [vmem:[#allocation5 + $0x220] sm:$0xff] }
  0x2a   :  { %1643 = vmatpush1.bf16.msra.mxu0 %v1642_v8  ;;  %v49_v16 = vld [vmem:[#allocation5 + $0x18] sm:$0xff]  ;;  %v53_v17 = vld [vmem:[#allocation5 + $0xa0] sm:$0xff]  ;;  %v1648_v18 = vpack.c.bf16 %v67_v13, %v63_v12  ;;  %v66_v19 = vld [vmem:[#allocation5 + $0x2a8] sm:$0xff] }
  0x2b   :  { %1645 = vmatprep.subr.bf16.mxu0 %v1644_v9  ;;  %v1672_v20 = vpack.c.bf16 %v53_v17, %v49_v16  ;;  %v48_v21 = vld [vmem:[#allocation5 + $0x10] sm:$0xff]  ;;  %v52_v22 = vld [vmem:[#allocation5 + $0x98] sm:$0xff]  ;;  %v75_v24 = vld [vmem:[#allocation5 + $0x3c0] sm:$0xff]  ;;  %v1650_v28 = vpack.c.bf16 %v66_v19, %v62_v15 }
  0x2c   :  { %v71_v23 = vld [vmem:[#allocation5 + $0x338] sm:$0xff]  ;;  %v1674_v25 = vpack.c.bf16 %v52_v22, %v48_v21  ;;  %v57_v26 = vld [vmem:[#allocation5 + $0x128] sm:$0xff]  ;;  %v61_v27 = vld [vmem:[#allocation5 + $0x1b0] sm:$0xff] }
  0x2d   :  { %1673 = vmatprep.subr.bf16.mxu1 %v1672_v20  ;;  %v70_v29 = vld [vmem:[#allocation5 + $0x330] sm:$0xff]  ;;  %v1676_v30 = vpack.c.bf16 %v61_v27, %v57_v26  ;;  %v56_v31 = vld [vmem:[#allocation5 + $0x120] sm:$0xff]  ;;  %v60_v32 = vld [vmem:[#allocation5 + $0x1a8] sm:$0xff]  ;;  %v1652_v33 = vpack.c.bf16 %v75_v24, %v71_v23 }
  0x2e   :  { %1647 = vmatpush1.bf16.msra.mxu0 %v1646_v14  ;;  %1675 = vmatpush1.bf16.msra.mxu1 %v1674_v25  ;;  %v74_v34 = vld [vmem:[#allocation5 + $0x3b8] sm:$0xff]  ;;  %v1678_v35 = vpack.c.bf16 %v60_v32, %v56_v31  ;;  %v69_v37 = vld [vmem:[#allocation5 + $0x2c0] sm:$0xff]  ;;  %v79_v38 = vld [vmem:[#allocation5 + $0x448] sm:$0xff] }
  0x2f   :  { %1649 = vmatprep.subr.bf16.mxu0 %v1648_v18  ;;  %v65_v36 = vld [vmem:[#allocation5 + $0x238] sm:$0xff]  ;;  %1677 = vmatprep.subr.bf16.mxu1 %v1676_v30  ;;  %v83_v39 = vld [vmem:[#allocation5 + $0x4d0] sm:$0xff]  ;;  %v1654_v43 = vpack.c.bf16 %v74_v34, %v70_v29  ;;  %v78_v44 = vld [vmem:[#allocation5 + $0x440] sm:$0xff] }
  0x30   :  { %v1680_v40 = vpack.c.bf16 %v69_v37, %v65_v36  ;;  %v64_v41 = vld [vmem:[#allocation5 + $0x230] sm:$0xff]  ;;  %v68_v42 = vld [vmem:[#allocation5 + $0x2b8] sm:$0xff]  ;;  %v73_v46 = vld [vmem:[#allocation5 + $0x348] sm:$0xff]  ;;  %v1656_v48 = vpack.c.bf16 %v83_v39, %v79_v38 }
  0x31   :  { %v1682_v45 = vpack.c.bf16 %v68_v42, %v64_v41  ;;  %v77_v47 = vld [vmem:[#allocation5 + $0x3d0] sm:$0xff]  ;;  %v82_v49 = vld [vmem:[#allocation5 + $0x4c8] sm:$0xff]  ;;  %v72_v51 = vld [vmem:[#allocation5 + $0x340] sm:$0xff] }
  0x32   :  { %1651 = vmatpush1.bf16.msra.mxu0 %v1650_v28  ;;  %1679 = vmatpush1.bf16.msra.mxu1 %v1678_v35  ;;  %v1684_v50 = vpack.c.bf16 %v77_v47, %v73_v46  ;;  %v76_v52 = vld [vmem:[#allocation5 + $0x3c8] sm:$0xff]  ;;  %v87_v53 = vld [vmem:[#allocation5 + $0x558] sm:$0xff]  ;;  %v91_v54 = vld [vmem:[#allocation5 + $0x5e0] sm:$0xff]  ;;  %v1658_v57 = vpack.c.bf16 %v82_v49, %v78_v44 }
  0x33   :  { %1653 = vmatprep.subr.bf16.mxu0 %v1652_v33  ;;  %1681 = vmatprep.subr.bf16.mxu1 %v1680_v40  ;;  %v81_v55 = vld [vmem:[#allocation5 + $0x458] sm:$0xff]  ;;  %v85_v56 = vld [vmem:[#allocation5 + $0x4e0] sm:$0xff]  ;;  %v86_v58 = vld [vmem:[#allocation5 + $0x550] sm:$0xff]  ;;  %v1686_v60 = vpack.c.bf16 %v76_v52, %v72_v51  ;;  %v1660_v61 = vpack.c.bf16 %v91_v54, %v87_v53 }
  0x34   :  { %v90_v59 = vld [vmem:[#allocation5 + $0x5d8] sm:$0xff]  ;;  %v95_v62 = vld [vmem:[#allocation5 + $0x668] sm:$0xff]  ;;  %v1688_v63 = vpack.c.bf16 %v85_v56, %v81_v55  ;;  %v80_v1 = vld [vmem:[#allocation5 + $0x450] sm:$0xff] }
  0x35   :  { %v84_v2 = vld [vmem:[#allocation5 + $0x4d8] sm:$0xff]  ;;  %v99_v3 = vld [vmem:[#allocation5 + $0x6f0] sm:$0xff]  ;;  %v89_v4 = vld [vmem:[#allocation5 + $0x568] sm:$0xff]  ;;  %v1662_v6 = vpack.c.bf16 %v90_v59, %v86_v58 }
  0x36   :  { %1655 = vmatpush1.bf16.msra.mxu0 %v1654_v43  ;;  %1683 = vmatpush1.bf16.msra.mxu1 %v1682_v45  ;;  %v93_v5 = vld [vmem:[#allocation5 + $0x5f0] sm:$0xff]  ;;  %v94_v7 = vld [vmem:[#allocation5 + $0x660] sm:$0xff]  ;;  %v98_v8 = vld [vmem:[#allocation5 + $0x6e8] sm:$0xff]  ;;  %v1690_v9 = vpack.c.bf16 %v84_v2, %v80_v1  ;;  %v1664_v10 = vpack.c.bf16 %v99_v3, %v95_v62 }
  0x37   :  { %1657 = vmatprep.subr.bf16.mxu0 %v1656_v48  ;;  %1685 = vmatprep.subr.bf16.mxu1 %v1684_v50  ;;  %v103_v11 = vld [vmem:[#allocation5 + $0x778] sm:$0xff]  ;;  %v1692_v12 = vpack.c.bf16 %v93_v5, %v89_v4  ;;  %v88_v13 = vld [vmem:[#allocation5 + $0x560] sm:$0xff]  ;;  %v92_v14 = vld [vmem:[#allocation5 + $0x5e8] sm:$0xff]  ;;  %v1666_v18 = vpack.c.bf16 %v98_v8, %v94_v7 }
  0x38   :  { %v107_v15 = vld [vmem:[#allocation5 + $0x800] sm:$0xff]  ;;  %v97_v16 = vld [vmem:[#allocation5 + $0x678] sm:$0xff]  ;;  %v102_v19 = vld [vmem:[#allocation5 + $0x770] sm:$0xff]  ;;  %v1694_v20 = vpack.c.bf16 %v92_v14, %v88_v13 }
  0x39   :  { %v101_v17 = vld [vmem:[#allocation5 + $0x700] sm:$0xff]  ;;  %v1668_v21 = vpack.c.bf16 %v107_v15, %v103_v11  ;;  %v106_v22 = vld [vmem:[#allocation5 + $0x7f8] sm:$0xff]  ;;  %v96_v24 = vld [vmem:[#allocation5 + $0x670] sm:$0xff] }
  0x3a   :  { %1659 = vmatpush1.bf16.msra.mxu0 %v1658_v57  ;;  %1687 = vmatpush1.bf16.msra.mxu1 %v1686_v60  ;;  %v1696_v23 = vpack.c.bf16 %v101_v17, %v97_v16  ;;  %v100_v25 = vld [vmem:[#allocation5 + $0x6f8] sm:$0xff]  ;;  %v105_v26 = vld [vmem:[#allocation5 + $0x788] sm:$0xff]  ;;  %v109_v27 = vld [vmem:[#allocation5 + $0x810] sm:$0xff]  ;;  %v1670_v28 = vpack.c.bf16 %v106_v22, %v102_v19 }
  0x3b   :  { %1661 = vmatprep.subr.bf16.mxu0 %v1660_v61  ;;  %1689 = vmatprep.subr.bf16.mxu1 %v1688_v63  ;;  %v1698_v29 = vpack.c.bf16 %v100_v25, %v96_v24  ;;  %v1700_v30 = vpack.c.bf16 %v109_v27, %v105_v26  ;;  %v104_v31 = vld [vmem:[#allocation5 + $0x780] sm:$0xff]  ;;  %v108_v32 = vld [vmem:[#allocation5 + $0x808] sm:$0xff]  ;;  %v42_v33 = vld [vmem:[%s2161_s0] sm:$0xff] }
  0x3c   :  { %v1702_v34 = vpack.c.bf16 %v108_v32, %v104_v31  ;;  %v43_v35 = vld [vmem:[%s2161_s0 + $0x8] sm:$0xff]  ;;  %v44_v36 = vld [vmem:[%s2161_s0 + $0x10] sm:$0xff]  ;;  %v45_v37 = vld [vmem:[%s2161_s0 + $0x18] sm:$0xff] }
  0x3d   :  { %v304_v38 = vld [vmem:[#allocation3] sm:$0xff]  ;;  %v403_v39 = vld [vmem:[#allocation5 + $0x28] sm:$0xff]  ;;  %v407_v40 = vld [vmem:[#allocation5 + $0xb0] sm:$0xff] }
  0x3e   :  { %1663 = vmatpush1.bf16.msra.mxu0 %v1662_v6  ;;  %1691 = vmatpush1.bf16.msra.mxu1 %v1690_v9  ;;  %v1736_v41 = vpack.c.bf16 %v407_v40, %v403_v39  ;;  %v402_v42 = vld [vmem:[#allocation5 + $0x20] sm:$0xff]  ;;  %v406_v43 = vld [vmem:[#allocation5 + $0xa8] sm:$0xff]  ;;  %v411_v45 = vld [vmem:[#allocation5 + $0x138] sm:$0xff] }
  0x3f   :  { %1665 = vmatprep.subr.bf16.mxu0 %v1664_v10  ;;  %1693 = vmatprep.subr.bf16.mxu1 %v1692_v12  ;;  %v1738_v44 = vpack.c.bf16 %v406_v43, %v402_v42  ;;  %v415_v46 = vld [vmem:[#allocation5 + $0x1c0] sm:$0xff]  ;;  %v410_v48 = vld [vmem:[#allocation5 + $0x130] sm:$0xff]  ;;  %v414_v49 = vld [vmem:[#allocation5 + $0x1b8] sm:$0xff] }
  0x40   :  { %v1740_v47 = vpack.c.bf16 %v415_v46, %v411_v45  ;;  %v1742_v50 = vpack.c.bf16 %v414_v49, %v410_v48  ;;  %v419_v51 = vld [vmem:[#allocation5 + $0x248] sm:$0xff]  ;;  %v423_v52 = vld [vmem:[#allocation5 + $0x2d0] sm:$0xff]  ;;  %v418_v54 = vld [vmem:[#allocation5 + $0x240] sm:$0xff] }
  0x41   :  { %v1744_v53 = vpack.c.bf16 %v423_v52, %v419_v51  ;;  %v422_v55 = vld [vmem:[#allocation5 + $0x2c8] sm:$0xff]  ;;  %v427_v57 = vld [vmem:[#allocation5 + $0x358] sm:$0xff]  ;;  %v431_v58 = vld [vmem:[#allocation5 + $0x3e0] sm:$0xff] }
  0x42   :  { %1667 = vmatpush1.bf16.msra.mxu0 %v1666_v18  ;;  %1695 = vmatpush1.bf16.msra.mxu1 %v1694_v20  ;;  %v1746_v56 = vpack.c.bf16 %v422_v55, %v418_v54  ;;  %v1748_v59 = vpack.c.bf16 %v431_v58, %v427_v57  ;;  %v426_v60 = vld [vmem:[#allocation5 + $0x350] sm:$0xff]  ;;  %v430_v61 = vld [vmem:[#allocation5 + $0x3d8] sm:$0xff]  ;;  %v435_v63 = vld [vmem:[#allocation5 + $0x468] sm:$0xff] }
  0x43   :  { %1669 = vmatprep.subr.bf16.mxu0 %v1668_v21  ;;  %1697 = vmatprep.subr.bf16.mxu1 %v1696_v23  ;;  %v1750_v62 = vpack.c.bf16 %v430_v61, %v426_v60  ;;  %v439_v1 = vld [vmem:[#allocation5 + $0x4f0] sm:$0xff]  ;;  %v434_v3 = vld [vmem:[#allocation5 + $0x460] sm:$0xff]  ;;  %v438_v4 = vld [vmem:[#allocation5 + $0x4e8] sm:$0xff] }
  0x44   :  { %v1752_v2 = vpack.c.bf16 %v439_v1, %v435_v63  ;;  %v1754_v5 = vpack.c.bf16 %v438_v4, %v434_v3  ;;  %v443_v6 = vld [vmem:[#allocation5 + $0x578] sm:$0xff]  ;;  %v447_v7 = vld [vmem:[#allocation5 + $0x600] sm:$0xff]  ;;  %v442_v9 = vld [vmem:[#allocation5 + $0x570] sm:$0xff] }
  0x45   :  { %v1756_v8 = vpack.c.bf16 %v447_v7, %v443_v6  ;;  %v446_v10 = vld [vmem:[#allocation5 + $0x5f8] sm:$0xff]  ;;  %v404_v39 = vld [vmem:[#allocation5 + $0x30] sm:$0xff]  ;;  %v305_v43 = vld [vmem:[#allocation3 + $0x8] sm:$0xff] }
  0x46   :  { %1671 = vmatpush1.bf16.msra.mxu0 %v1670_v28  ;;  %1699 = vmatpush1.bf16.msra.mxu1 %v1698_v29  ;;  %v1758_v11 = vpack.c.bf16 %v446_v10, %v442_v9  ;;  %v408_v40 = vld [vmem:[#allocation5 + $0xb8] sm:$0xff]  ;;  %v417_v42 = vld [vmem:[#allocation5 + $0x1d0] sm:$0xff]  ;;  %v412_v46 = vld [vmem:[#allocation5 + $0x140] sm:$0xff] }
  0x47   :  { %1701 = vmatprep.subr.bf16.mxu1 %v1700_v30  ;;  %v421_v48 = vld [vmem:[#allocation5 + $0x258] sm:$0xff]  ;;  %v425_v49 = vld [vmem:[#allocation5 + $0x2e0] sm:$0xff]  ;;  %v420_v52 = vld [vmem:[#allocation5 + $0x250] sm:$0xff] }
  0x48   :  { %v1776_v51 = vpack.c.bf16 %v425_v49, %v421_v48  ;;  %v429_v54 = vld [vmem:[#allocation5 + $0x368] sm:$0xff]  ;;  %v433_v55 = vld [vmem:[#allocation5 + $0x3f0] sm:$0xff]  ;;  %v428_v58 = vld [vmem:[#allocation5 + $0x360] sm:$0xff] }
  0x49   :  { %175 = vmatmul.mubr.f32.vlgmr.msra.gmra.mrb[0].mxu0 %v42_v33  ;;  %v1780_v57 = vpack.c.bf16 %v433_v55, %v429_v54  ;;  %v437_v60 = vld [vmem:[#allocation5 + $0x478] sm:$0xff]  ;;  %v441_v61 = vld [vmem:[#allocation5 + $0x500] sm:$0xff]  ;;  %v436_v1 = vld [vmem:[#allocation5 + $0x470] sm:$0xff] }
  0x4a   :  { %180 = vmatprep.mubr.f32.mxu0 %v2039_v0  ;;  %1703 = vmatpush1.bf16.msra.mxu1 %v1702_v34  ;;  %v1784_v63 = vpack.c.bf16 %v441_v61, %v437_v60  ;;  %v445_v3 = vld [vmem:[#allocation5 + $0x588] sm:$0xff]  ;;  %v449_v4 = vld [vmem:[#allocation5 + $0x610] sm:$0xff]  ;;  %v444_v7 = vld [vmem:[#allocation5 + $0x580] sm:$0xff] }
  0x4b   :  { %1737 = vmatprep.subr.bf16.mxu1 %v1736_v41  ;;  %v413_v41 = vld [vmem:[#allocation5 + $0x148] sm:$0xff]  ;;  %v1788_v6 = vpack.c.bf16 %v449_v4, %v445_v3  ;;  %v726_v54 = vld [vmem:[#allocation5 + $0x1d8] sm:$0xff]  ;;  %vm1940_vm5 = vmpackc.low %vm1205_vm3, %vm2042_vm4 }
  0x4c   :  { %v1772_v45 = vpack.c.bf16 %v417_v42, %v413_v41  ;;  %v451_v10 = vld [vmem:[#allocation5 + $0x688] sm:$0xff]  ;;  %v742_v3 = vld [vmem:[#allocation5 + $0x3f8] sm:$0xff] }
  0x4d   :  { %181 = vmatmul.mubr.f32.gmra.mrb[2].mxu0 %v43_v35  ;;  %264 = vmatmul.mubr.f32.vlgmr.msra.gmra.mrb[0].mxu1 %v42_v33  ;;  %v718_v48 = vld [vmem:[#allocation5 + $0xc8] sm:$0xff] }
  0x4e   :  { %186 = vmatprep.mubr.f32.mxu0 %v2039_v0  ;;  %269 = vmatprep.mubr.f32.mxu1 %v2039_v0  ;;  %v734_v60 = vld [vmem:[#allocation5 + $0x2e8] sm:$0xff] }
  0x4f   :  { %1739 = vmatpush1.bf16.msra.mxu1 %v1738_v44  ;;  %v1770_v44 = vpack.c.bf16 %v408_v40, %v404_v39 }
  0x50   :  { %1741 = vmatprep.subr.bf16.mxu1 %v1740_v47  ;;  %v416_v47 = vld [vmem:[#allocation5 + $0x1c8] sm:$0xff] }
  0x51   :  { %187 = vmatmul.mubr.f32.gmra.mrb[4].mxu0 %v44_v36  ;;  %270 = vmatmul.mubr.f32.gmra.mrb[2].mxu1 %v43_v35 }
  0x52   :  { %192 = vmatprep.mubr.f32.mxu0 %v2039_v0  ;;  %275 = vmatprep.mubr.f32.mxu1 %v2039_v0 }
  0x53   :  { %1743 = vmatpush1.bf16.msra.mxu1 %v1742_v50  ;;  %v1774_v50 = vpack.c.bf16 %v416_v47, %v412_v46  ;;  %v714_v47 = vld [vmem:[#allocation5 + $0x40] sm:$0xff] }
  0x54   :  { %1745 = vmatprep.subr.bf16.mxu1 %v1744_v53  ;;  %v424_v53 = vld [vmem:[#allocation5 + $0x2d8] sm:$0xff]  ;;  %v1814_v49 = vpack.c.bf16 %v718_v48, %v714_v47 }
  0x55   :  { %193 = vmatmul.mubr.f32.gmra.mrb[6].mxu0 %v45_v37  ;;  %276 = vmatmul.mubr.f32.gmra.mrb[4].mxu1 %v44_v36  ;;  %v405_v36 = vld [vmem:[#allocation5 + $0x38] sm:$0xff] }
  0x56   :  { %281 = vmatprep.mubr.f32.mxu1 %v2039_v0  ;;  %1560 = vmatprep.mubr.f32.mxu0 %v304_v38 }
  0x57   :  { %1747 = vmatpush1.bf16.msra.mxu1 %v1746_v56  ;;  %v1778_v56 = vpack.c.bf16 %v424_v53, %v420_v52  ;;  %v722_v53 = vld [vmem:[#allocation5 + $0x150] sm:$0xff] }
  0x58   :  { %1749 = vmatprep.subr.bf16.mxu1 %v1748_v59  ;;  %v432_v59 = vld [vmem:[#allocation5 + $0x3e8] sm:$0xff]  ;;  %v1818_v55 = vpack.c.bf16 %v726_v54, %v722_v53 }
  0x59   :  { %282 = vmatmul.mubr.f32.gmra.mrb[6].mxu1 %v45_v37  ;;  %v409_v37 = vld [vmem:[#allocation5 + $0xc0] sm:$0xff] }
  0x5a   :  { %530 = vmatprep.mubr.f32.mxu1 %v2039_v0  ;;  %v1768_v38 = vpack.c.bf16 %v409_v37, %v405_v36 }
  0x5b   :  { %1751 = vmatpush1.bf16.msra.mxu1 %v1750_v62  ;;  %v1782_v62 = vpack.c.bf16 %v432_v59, %v428_v58  ;;  %v730_v59 = vld [vmem:[#allocation5 + $0x260] sm:$0xff] }
  0x5c   :  { %1753 = vmatprep.subr.bf16.mxu1 %v1752_v2  ;;  %v440_v2 = vld [vmem:[#allocation5 + $0x4f8] sm:$0xff]  ;;  %v1822_v61 = vpack.c.bf16 %v734_v60, %v730_v59 }
  0x5f   :  { %1755 = vmatpush1.bf16.msra.mxu1 %v1754_v5  ;;  %v1786_v5 = vpack.c.bf16 %v440_v2, %v436_v1  ;;  %v738_v2 = vld [vmem:[#allocation5 + $0x370] sm:$0xff] }
  0x60   :  { %1757 = vmatprep.subr.bf16.mxu1 %v1756_v8  ;;  %v448_v8 = vld [vmem:[#allocation5 + $0x608] sm:$0xff]  ;;  %v1826_v4 = vpack.c.bf16 %v742_v3, %v738_v2  ;;  %v756_v3 = vld [vmem:[#allocation5 + $0x5a0] sm:$0xff] }
  0x61   :  { %v1790_v9 = vpack.c.bf16 %v448_v8, %v444_v7  ;;  %v746_v8 = vld [vmem:[#allocation5 + $0x480] sm:$0xff] }
  0x63   :  { %1759 = vmatpush1.bf16.msra.mxu1 %v1758_v11  ;;  %v455_v11 = vld [vmem:[#allocation5 + $0x710] sm:$0xff] }
 0x11c   :  { %v176_v12 = vpop.f32.mrb[0].mxu0 }
 0x11d   :  { %v178_v13 = vpop.f32.mrb[1].mxu0 }
 0x120   :  { %v182_v14 = vpop.f32.mrb[2].mxu0  ;;  %v265_v15 = vpop.f32.mrb[0].mxu1 }
 0x121   :  { %v184_v16 = vpop.f32.mrb[3].mxu0  ;;  %v267_v17 = vpop.f32.mrb[1].mxu1  ;;  %v1704_v18 = vpack.c.bf16 %v182_v14, %v176_v12  ;;  %v453_v12 = vld [vmem:[#allocation5 + $0x698] sm:$0xff]  ;;  %v457_v14 = vld [vmem:[#allocation5 + $0x720] sm:$0xff] }
 0x122   :  { %v1712_v19 = vpack.c.bf16 %v184_v16, %v178_v13  ;;  %v1760_v13 = vpack.c.bf16 %v455_v11, %v451_v10  ;;  %v454_v16 = vld [vmem:[#allocation5 + $0x708] sm:$0xff]  ;;  %v755_v11 = vld [vmem:[#allocation5 + $0x598] sm:$0xff] }
 0x123   :  { %1705 = vmatprep.subr.bf16.mxu0 %v1704_v18 }
 0x124   :  { %v188_v20 = vpop.f32.mrb[4].mxu0  ;;  %v271_v21 = vpop.f32.mrb[2].mxu1  ;;  %1707 = vmatpush3.bf16.msra.mxu0 %v1704_v18  ;;  %1761 = vmatprep.subr.bf16.mxu1 %v1760_v13 }
 0x125   :  { %v190_v22 = vpop.f32.mrb[5].mxu0  ;;  %v273_v23 = vpop.f32.mrb[3].mxu1  ;;  %v1720_v24 = vpack.c.bf16 %v271_v21, %v265_v15  ;;  %v450_v15 = vld [vmem:[#allocation5 + $0x680] sm:$0xff] }
 0x126   :  { %v1728_v25 = vpack.c.bf16 %v273_v23, %v267_v17  ;;  %v1792_v17 = vpack.c.bf16 %v457_v14, %v453_v12  ;;  %v1762_v18 = vpack.c.bf16 %v454_v16, %v450_v15  ;;  %v463_v23 = vld [vmem:[#allocation5 + $0x820] sm:$0xff]  ;;  %v754_v14 = vld [vmem:[#allocation5 + $0x590] sm:$0xff]  ;;  %v758_v15 = vld [vmem:[#allocation5 + $0x618] sm:$0xff] }
 0x127   :  { %v759_v12 = vld [vmem:[#allocation5 + $0x620] sm:$0xff]  ;;  %v1834_v16 = vpack.c.bf16 %v758_v15, %v754_v14  ;;  %v771_v15 = vld [vmem:[#allocation5 + $0x7b8] sm:$0xff] }
 0x128   :  { %v194_v26 = vpop.f32.mrb[6].mxu0  ;;  %v277_v27 = vpop.f32.mrb[4].mxu1  ;;  %1763 = vmatpush1.bf16.msra.mxu1 %v1762_v18  ;;  %v1832_v13 = vpack.c.bf16 %v759_v12, %v755_v11  ;;  %v767_v18 = vld [vmem:[#allocation5 + $0x730] sm:$0xff] }
 0x129   :  { %v196_v28 = vpop.f32.mrb[7].mxu0  ;;  %v279_v29 = vpop.f32.mrb[5].mxu1  ;;  %v1708_v30 = vpack.c.bf16 %v194_v26, %v188_v20  ;;  %v456_v20 = vld [vmem:[#allocation5 + $0x718] sm:$0xff]  ;;  %v465_v26 = vld [vmem:[#allocation5 + $0x830] sm:$0xff] }
 0x12a   :  { %v1716_v31 = vpack.c.bf16 %v196_v28, %v190_v22  ;;  %v459_v22 = vld [vmem:[#allocation5 + $0x798] sm:$0xff]  ;;  %v764_v11 = vld [vmem:[#allocation5 + $0x6b0] sm:$0xff] }
 0x12b   :  { %1709 = vmatprep.subr.bf16.mxu0 %v1708_v30  ;;  %v462_v28 = vld [vmem:[#allocation5 + $0x818] sm:$0xff] }
 0x12c   :  { %v283_v32 = vpop.f32.mrb[6].mxu1  ;;  %1711 = vmatpush3.bf16.msra.mxu0 %v1708_v30 }
 0x12d   :  { %v285_v33 = vpop.f32.mrb[7].mxu1  ;;  %1713 = vmatprep.subr.bf16.mxu0 %v1712_v19  ;;  %v1724_v34 = vpack.c.bf16 %v283_v32, %v277_v27  ;;  %v458_v27 = vld [vmem:[#allocation5 + $0x790] sm:$0xff]  ;;  %v464_v32 = vld [vmem:[#allocation5 + $0x828] sm:$0xff] }
 0x12e   :  { %v1732_v35 = vpack.c.bf16 %v285_v33, %v279_v29  ;;  %v1766_v30 = vpack.c.bf16 %v462_v28, %v458_v27 }
 0x130   :  { %1715 = vmatpush3.bf16.msra.mxu0 %v1712_v19  ;;  %v452_v19 = vld [vmem:[#allocation5 + $0x690] sm:$0xff] }
 0x131   :  { %1717 = vmatprep.subr.bf16.mxu0 %v1716_v31  ;;  %v1794_v21 = vpack.c.bf16 %v456_v20, %v452_v19 }
 0x134   :  { %1719 = vmatpush3.bf16.msra.mxu0 %v1716_v31  ;;  %v460_v31 = vld [vmem:[#allocation5 + $0x7a0] sm:$0xff] }
 0x135   :  { %1721 = vmatprep.subr.bf16.mxu0 %v1720_v24  ;;  %v1798_v33 = vpack.c.bf16 %v464_v32, %v460_v31  ;;  %v717_v32 = vld [vmem:[#allocation5 + $0x58] sm:$0xff] }
 0x138   :  { %1723 = vmatpush3.bf16.msra.mxu0 %v1720_v24  ;;  %v461_v24 = vld [vmem:[#allocation5 + $0x7a8] sm:$0xff] }
 0x139   :  { %1725 = vmatprep.subr.bf16.mxu0 %v1724_v34  ;;  %v1796_v29 = vpack.c.bf16 %v465_v26, %v461_v24 }
 0x13c   :  { %1727 = vmatpush3.bf16.msra.mxu0 %v1724_v34  ;;  %v322_v34 = vld [vmem:[#allocation5 + $0x880] ss:$0 sm:$0xff] }
 0x13d   :  { %1729 = vmatprep.subr.bf16.mxu0 %v1728_v25 }
 0x140   :  { %1731 = vmatpush3.bf16.msra.mxu0 %v1728_v25  ;;  %v1764_v25 = vpack.c.bf16 %v463_v23, %v459_v22 }
 0x141   :  { %1733 = vmatprep.subr.bf16.mxu0 %v1732_v35 }
 0x142   :  { %1765 = vmatprep.subr.bf16.mxu1 %v1764_v25 }
 0x143   :  { %1767 = vmatpush1.bf16.msra.mxu1 %v1766_v30 }
 0x144   :  { %1735 = vmatpush3.bf16.msra.mxu0 %v1732_v35 }
 0x145   :  { %1769 = vmatprep.subr.bf16.mxu0 %v1768_v38 }
 0x147   :  { %1561 = vmatmul.mubr.f32.vlgmr.msra.gmra.mrb[8].mxu0 %v305_v43  ;;  %v2040_v43 = vmov 0.0|0.0  }
 0x148   :  { %1771 = vmatpush1.bf16.msra.mxu0 %v1770_v44  ;;  %607 = vmatprep.mubr.f32.mxu0 %v2039_v0  ;;  %v715_v44 = vld [vmem:[#allocation5 + $0x48] sm:$0xff] }
 0x149   :  { %1773 = vmatprep.subr.bf16.mxu0 %v1772_v45  ;;  %v719_v45 = vld [vmem:[#allocation5 + $0xd0] sm:$0xff] }
 0x14a   :  { %v1812_v46 = vpack.c.bf16 %v719_v45, %v715_v44  ;;  %v728_v44 = vld [vmem:[#allocation5 + $0x1e8] sm:$0xff]  ;;  %v733_v45 = vld [vmem:[#allocation5 + $0x278] sm:$0xff] }
 0x14c   :  { %1775 = vmatpush1.bf16.msra.mxu0 %v1774_v50  ;;  %v723_v50 = vld [vmem:[#allocation5 + $0x158] sm:$0xff]  ;;  %1813 = vmatprep.subr.bf16.mxu1 %v1812_v46  ;;  %v737_v46 = vld [vmem:[#allocation5 + $0x300] sm:$0xff] }
 0x14d   :  { %1777 = vmatprep.subr.bf16.mxu0 %v1776_v51  ;;  %v727_v51 = vld [vmem:[#allocation5 + $0x1e0] sm:$0xff]  ;;  %v1852_v48 = vpack.c.bf16 %v737_v46, %v733_v45  ;;  %v1029_v45 = vld [vmem:[#allocation5 + $0x428] sm:$0xff] }
 0x14e   :  { %v1816_v52 = vpack.c.bf16 %v727_v51, %v723_v50  ;;  %v736_v50 = vld [vmem:[#allocation5 + $0x2f8] sm:$0xff]  ;;  %v741_v51 = vld [vmem:[#allocation5 + $0x388] sm:$0xff] }
 0x150   :  { %1779 = vmatpush1.bf16.msra.mxu0 %v1778_v56  ;;  %v731_v56 = vld [vmem:[#allocation5 + $0x268] sm:$0xff] }
 0x151   :  { %1781 = vmatprep.subr.bf16.mxu0 %v1780_v57  ;;  %v735_v57 = vld [vmem:[#allocation5 + $0x2f0] sm:$0xff] }
 0x152   :  { %v1820_v58 = vpack.c.bf16 %v735_v57, %v731_v56  ;;  %v744_v56 = vld [vmem:[#allocation5 + $0x408] sm:$0xff]  ;;  %v749_v57 = vld [vmem:[#allocation5 + $0x498] sm:$0xff] }
 0x154   :  { %1783 = vmatpush1.bf16.msra.mxu0 %v1782_v62  ;;  %v739_v62 = vld [vmem:[#allocation5 + $0x378] sm:$0xff] }
 0x155   :  { %1785 = vmatprep.subr.bf16.mxu0 %v1784_v63  ;;  %v743_v63 = vld [vmem:[#allocation5 + $0x400] sm:$0xff] }
 0x156   :  { %v1824_v1 = vpack.c.bf16 %v743_v63, %v739_v62  ;;  %v757_v62 = vld [vmem:[#allocation5 + $0x5a8] sm:$0xff]  ;;  %v761_v63 = vld [vmem:[#allocation5 + $0x630] sm:$0xff] }
 0x157   :  { %v1864_v2 = vpack.c.bf16 %v761_v63, %v757_v62  ;;  %v1009_v62 = vld [vmem:[#allocation5 + $0xe8] sm:$0xff]  ;;  %v1013_v63 = vld [vmem:[#allocation5 + $0x178] sm:$0xff] }
 0x158   :  { %1787 = vmatpush1.bf16.msra.mxu0 %v1786_v5  ;;  %v747_v5 = vld [vmem:[#allocation5 + $0x488] sm:$0xff] }
 0x159   :  { %1789 = vmatprep.subr.bf16.mxu0 %v1788_v6  ;;  %v751_v6 = vld [vmem:[#allocation5 + $0x510] sm:$0xff] }
 0x15a   :  { %v1828_v7 = vpack.c.bf16 %v751_v6, %v747_v5  ;;  %v765_v5 = vld [vmem:[#allocation5 + $0x6b8] sm:$0xff]  ;;  %v769_v6 = vld [vmem:[#allocation5 + $0x740] sm:$0xff] }
 0x15c   :  { %1791 = vmatpush1.bf16.msra.mxu0 %v1790_v9  ;;  %v750_v9 = vld [vmem:[#allocation5 + $0x508] sm:$0xff] }
 0x15d   :  { %1793 = vmatprep.subr.bf16.mxu0 %v1792_v17  ;;  %v1830_v10 = vpack.c.bf16 %v750_v9, %v746_v8  ;;  %v763_v17 = vld [vmem:[#allocation5 + $0x6a8] sm:$0xff]  ;;  %v1868_v8 = vpack.c.bf16 %v769_v6, %v765_v5  ;;  %v762_v9 = vld [vmem:[#allocation5 + $0x6a0] sm:$0xff]  ;;  %v1012_v5 = vld [vmem:[#allocation5 + $0x170] sm:$0xff] }
 0x15e   :  { %v1836_v19 = vpack.c.bf16 %v767_v18, %v763_v17  ;;  %v773_v17 = vld [vmem:[#allocation5 + $0x7c8] sm:$0xff]  ;;  %v1015_v6 = vld [vmem:[#allocation5 + $0x1f8] sm:$0xff] }
 0x160   :  { %1795 = vmatpush1.bf16.msra.mxu0 %v1794_v21 }
 0x161   :  { %1797 = vmatprep.subr.bf16.mxu0 %v1796_v29 }
 0x164   :  { %1799 = vmatpush1.bf16.msra.mxu0 %v1798_v33  ;;  %v721_v33 = vld [vmem:[#allocation5 + $0xe0] sm:$0xff] }
 0x165   :  { %1800 = vmatprep.subr.bf16.mxu0 %v2040_v43 }
 0x21a   :  { %v1562_v35 = vpop.f32.mrb[8].mxu0 }
 0x21b   :  { %v389_v36 = vpop.f32.mrb[9].mxu0  ;;  %v395_v37 = vadd.f32 %v1562_v35, %v322_v34  ;;  %v716_v35 = vld [vmem:[#allocation5 + $0x50] sm:$0xff] }
 0x21c   :  { %v390_v38 = vadd.f32 %v389_v36, %v322_v34  ;;  %v1844_v34 = vpack.c.bf16 %v721_v33, %v717_v32  ;;  %v720_v36 = vld [vmem:[#allocation5 + $0xd8] sm:$0xff] }
 0x21d   :  { %v399_v40 = vmul.f32 0.1, %v395_v37  ;;  %v2128_v33 = vld [vmem:[%s2164_s3] sm:$0xff] }
 0x21e   :  { %v398_v39 = vmul.f32 0.1, %v390_v38 }
 0x21f   :  { %v401_v42 = vmax.f32 %v395_v37, %v399_v40  ;;  %v725_v37 = vld [vmem:[#allocation5 + $0x168] sm:$0xff]  ;;  %v1846_v40 = vpack.c.bf16 %v720_v36, %v716_v35  ;;  %v1011_v35 = vld [vmem:[#allocation5 + $0xf8] sm:$0xff] }
 0x220   :  { %v400_v41 = vmax.f32 %v390_v38, %v398_v39  ;;  %v729_v38 = vld [vmem:[#allocation5 + $0x1f0] sm:$0xff]  ;;  %v628_v39 = vld [vmem:[#allocation3 + $0x10] sm:$0xff] }
 0x222   :  { %531 = vmatmul.mubr.f32.vlgmr.msra.gmra.mrb[8].mxu1 %v400_v41  ;;  %608 = vmatmul.mubr.f32.vlgmr.msra.gmra.mrb[10].mxu0 %v400_v41  ;;  %v1848_v41 = vpack.c.bf16 %v729_v38, %v725_v37  ;;  %v1014_v37 = vld [vmem:[#allocation5 + $0x180] sm:$0xff]  ;;  %v1017_v38 = vld [vmem:[#allocation5 + $0x208] sm:$0xff] }
 0x223   :  { %536 = vmatprep.mubr.f32.mxu1 %v2039_v0  ;;  %613 = vmatprep.mubr.f32.mxu0 %v2039_v0 }
 0x224   :  { %1815 = vmatpush1.bf16.msra.mxu1 %v1814_v49  ;;  %v732_v49 = vld [vmem:[#allocation5 + $0x270] sm:$0xff] }
 0x225   :  { %1817 = vmatprep.subr.bf16.mxu1 %v1816_v52  ;;  %v745_v52 = vld [vmem:[#allocation5 + $0x410] sm:$0xff]  ;;  %v1854_v53 = vpack.c.bf16 %v736_v50, %v732_v49  ;;  %v1038_v50 = vld [vmem:[#allocation5 + $0x5c0] sm:$0xff] }
 0x226   :  { %537 = vmatmul.mubr.f32.gmra.mrb[10].mxu1 %v401_v42  ;;  %614 = vmatmul.mubr.f32.gmra.mrb[12].mxu0 %v401_v42  ;;  %v724_v42 = vld [vmem:[#allocation5 + $0x160] sm:$0xff]  ;;  %v1856_v54 = vpack.c.bf16 %v745_v52, %v741_v51  ;;  %v1041_v51 = vld [vmem:[#allocation5 + $0x648] sm:$0xff] }
 0x227   :  { %842 = vmatprep.mubr.f32.mxu1 %v2039_v0  ;;  %1579 = vmatprep.mubr.msk.f32.mxu0 %vm2041_vm0, %v2039_v0  ;;  %v1850_v47 = vpack.c.bf16 %v728_v44, %v724_v42  ;;  %v1026_v44 = vld [vmem:[#allocation5 + $0x3a0] sm:$0xff]  ;;  %v1930_v52 = vpack.c.bf16 %v1041_v51, %v1038_v50  ;;  %v1053_v50 = vld [vmem:[#allocation5 + $0x868] sm:$0xff] }
 0x228   :  { %1819 = vmatpush1.bf16.msra.mxu1 %v1818_v55  ;;  %v740_v55 = vld [vmem:[#allocation5 + $0x380] sm:$0xff]  ;;  %v1924_v46 = vpack.c.bf16 %v1029_v45, %v1026_v44 }
 0x229   :  { %1821 = vmatprep.subr.bf16.mxu1 %v1820_v58  ;;  %v753_v58 = vld [vmem:[#allocation5 + $0x520] sm:$0xff]  ;;  %v1858_v59 = vpack.c.bf16 %v744_v56, %v740_v55 }
 0x22a   :  { %v1860_v60 = vpack.c.bf16 %v753_v58, %v749_v57  ;;  %v1052_v44 = vld [vmem:[#allocation5 + $0x860] sm:$0xff] }
 0x22c   :  { %1823 = vmatpush1.bf16.msra.mxu1 %v1822_v61  ;;  %v748_v61 = vld [vmem:[#allocation5 + $0x490] sm:$0xff] }
 0x22d   :  { %1825 = vmatprep.subr.bf16.mxu1 %v1824_v1 }
 0x230   :  { %1827 = vmatpush1.bf16.msra.mxu1 %v1826_v4  ;;  %v760_v4 = vld [vmem:[#allocation5 + $0x628] sm:$0xff] }
 0x231   :  { %1829 = vmatprep.subr.bf16.mxu1 %v1828_v7  ;;  %v1866_v7 = vpack.c.bf16 %v760_v4, %v756_v3 }
 0x234   :  { %1831 = vmatpush1.bf16.msra.mxu1 %v1830_v10  ;;  %v766_v10 = vld [vmem:[#allocation5 + $0x728] sm:$0xff] }
 0x235   :  { %1833 = vmatprep.subr.bf16.mxu1 %v1832_v13  ;;  %v1838_v12 = vpack.c.bf16 %v766_v10, %v762_v9  ;;  %v768_v13 = vld [vmem:[#allocation5 + $0x738] sm:$0xff]  ;;  %v1888_v9 = vpack.c.bf16 %v1015_v6, %v1012_v5  ;;  %v1284_v5 = vld [vmem:[#allocation5 + $0x190] sm:$0xff] }
 0x236   :  { %v1870_v14 = vpack.c.bf16 %v768_v13, %v764_v11  ;;  %v1018_v11 = vld [vmem:[#allocation5 + $0x280] sm:$0xff]  ;;  %v1025_v13 = vld [vmem:[#allocation5 + $0x398] sm:$0xff] }
 0x237   :  { %v1286_v6 = vld [vmem:[#allocation5 + $0x218] sm:$0xff] }
 0x238   :  { %1835 = vmatpush1.bf16.msra.mxu1 %v1834_v16  ;;  %v775_v16 = vld [vmem:[#allocation5 + $0x840] sm:$0xff] }
 0x239   :  { %1837 = vmatprep.subr.bf16.mxu1 %v1836_v19  ;;  %v1840_v18 = vpack.c.bf16 %v775_v16, %v771_v15  ;;  %v777_v19 = vld [vmem:[#allocation5 + $0x850] sm:$0xff] }
 0x23c   :  { %1839 = vmatpush1.bf16.msra.mxu1 %v1838_v12  ;;  %v1021_v12 = vld [vmem:[#allocation5 + $0x308] sm:$0xff] }
 0x23d   :  { %1841 = vmatprep.subr.bf16.mxu1 %v1840_v18  ;;  %v1892_v15 = vpack.c.bf16 %v1021_v12, %v1018_v11  ;;  %v1027_v18 = vld [vmem:[#allocation5 + $0x418] sm:$0xff]  ;;  %v1285_v11 = vld [vmem:[#allocation5 + $0x210] sm:$0xff]  ;;  %v1288_v12 = vld [vmem:[#allocation5 + $0x2a0] sm:$0xff] }
 0x2f5   :  { %v532_v20 = vpop.f32.mrb[8].mxu1  ;;  %v609_v21 = vpop.f32.mrb[10].mxu0 }
 0x2f6   :  { %v534_v22 = vpop.f32.mrb[9].mxu1  ;;  %v611_v23 = vpop.f32.mrb[11].mxu0 }
 0x2f9   :  { %v538_v24 = vpop.f32.mrb[10].mxu1  ;;  %v615_v25 = vpop.f32.mrb[12].mxu0 }
 0x2fa   :  { %v540_v26 = vpop.f32.mrb[11].mxu1  ;;  %v617_v27 = vpop.f32.mrb[13].mxu0  ;;  %v1801_v28 = vpack.c.bf16 %v538_v24, %v532_v20  ;;  %v1807_v29 = vpack.c.bf16 %v615_v25, %v609_v21  ;;  %v770_v20 = vld [vmem:[#allocation5 + $0x7b0] sm:$0xff]  ;;  %v774_v21 = vld [vmem:[#allocation5 + $0x838] sm:$0xff]  ;;  %v772_v24 = vld [vmem:[#allocation5 + $0x7c0] sm:$0xff] }
 0x2fb   :  { %v1804_v30 = vpack.c.bf16 %v540_v26, %v534_v22  ;;  %v1810_v31 = vpack.c.bf16 %v617_v27, %v611_v23  ;;  %v1872_v22 = vpack.c.bf16 %v777_v19, %v773_v17  ;;  %v1842_v23 = vpack.c.bf16 %v774_v21, %v770_v20  ;;  %v776_v25 = vld [vmem:[#allocation5 + $0x848] sm:$0xff]  ;;  %v637_v27 = vld [vmem:[#allocation5 + $0x8a0] ss:$0 sm:$0xff]  ;;  %v1024_v17 = vld [vmem:[#allocation5 + $0x390] sm:$0xff] }
 0x2fc   :  { %1802 = vmatpush3.bf16.msra.mxu0 %v1801_v28  ;;  %v1874_v26 = vpack.c.bf16 %v776_v25, %v772_v24  ;;  %v1031_v19 = vld [vmem:[#allocation5 + $0x4a8] sm:$0xff]  ;;  %v1034_v20 = vld [vmem:[#allocation5 + $0x530] sm:$0xff]  ;;  %v1896_v21 = vpack.c.bf16 %v1027_v18, %v1024_v17  ;;  %v1037_v25 = vld [vmem:[#allocation5 + $0x5b8] sm:$0xff] }
 0x2fd   :  { %1803 = vmatprep.subr.bf16.mxu0 %v2040_v43  ;;  %1843 = vmatpush1.bf16.msra.mxu1 %v1842_v23  ;;  %v1030_v23 = vld [vmem:[#allocation5 + $0x4a0] sm:$0xff]  ;;  %v1033_v24 = vld [vmem:[#allocation5 + $0x528] sm:$0xff]  ;;  %v1292_v18 = vld [vmem:[#allocation5 + $0x3b0] sm:$0xff] }
 0x2fe   :  { %1876 = vmatprep.subr.bf16.mxu1 %v2040_v43  ;;  %v1289_v17 = vld [vmem:[#allocation5 + $0x320] sm:$0xff] }
 0x300   :  { %1805 = vmatpush3.bf16.msra.mxu0 %v1804_v30 }
 0x301   :  { %1806 = vmatprep.subr.bf16.mxu0 %v2040_v43 }
 0x304   :  { %1808 = vmatpush3.bf16.msra.mxu0 %v1807_v29 }
 0x305   :  { %1809 = vmatprep.subr.bf16.mxu0 %v2040_v43 }
 0x308   :  { %1811 = vmatpush3.bf16.msra.mxu0 %v1810_v31 }
 0x309   :  { %1845 = vmatprep.subr.bf16.mxu0 %v1844_v34  ;;  %v1008_v34 = vld [vmem:[#allocation5 + $0x70] sm:$0xff] }
 0x30a   :  { %v1915_v36 = vpack.c.bf16 %v1011_v35, %v1008_v34 }
 0x30b   :  { %1580 = vmatmul.mubr.msk.f32.vlgmr.msra.gmra.mrb[14].mxu0 %vm638_vm1, %v628_v39  ;;  %v1918_v39 = vpack.c.bf16 %v1017_v38, %v1014_v37  ;;  %v1045_v37 = vld [vmem:[#allocation5 + $0x748] sm:$0xff]  ;;  %v1044_v38 = vld [vmem:[#allocation5 + $0x6d0] sm:$0xff] }
 0x30c   :  { %1847 = vmatpush1.bf16.msra.mxu0 %v1846_v40  ;;  %913 = vmatprep.mubr.f32.mxu0 %v2039_v0  ;;  %v752_v0 = vld [vmem:[#allocation5 + $0x518] sm:$0xff]  ;;  %v1020_v40 = vld [vmem:[#allocation5 + $0x290] sm:$0xff] }
 0x30d   :  { %1849 = vmatprep.subr.bf16.mxu0 %v1848_v41  ;;  %v1862_v1 = vpack.c.bf16 %v752_v0, %v748_v61  ;;  %v1023_v41 = vld [vmem:[#allocation5 + $0x318] sm:$0xff]  ;;  %v1006_v0 = vld [vmem:[#allocation5 + $0x60] sm:$0xff] }
 0x30e   :  { %v1921_v42 = vpack.c.bf16 %v1023_v41, %v1020_v40  ;;  %v1884_v3 = vpack.c.bf16 %v1009_v62, %v1006_v0  ;;  %v1047_v40 = vld [vmem:[#allocation5 + $0x758] sm:$0xff]  ;;  %v1282_v0 = vld [vmem:[#allocation5 + $0x108] sm:$0xff] }
 0x30f   :  { %v1933_v41 = vpack.c.bf16 %v1047_v40, %v1044_v38  ;;  %v1306_v38 = vld [vmem:[#allocation5 + $0x768] sm:$0xff] }
 0x310   :  { %1851 = vmatpush1.bf16.msra.mxu0 %v1850_v47  ;;  %v1032_v47 = vld [vmem:[#allocation5 + $0x4b0] sm:$0xff] }
 0x311   :  { %1853 = vmatprep.subr.bf16.mxu0 %v1852_v48  ;;  %v1035_v48 = vld [vmem:[#allocation5 + $0x538] sm:$0xff] }
 0x312   :  { %v1927_v49 = vpack.c.bf16 %v1035_v48, %v1032_v47  ;;  %v1051_v47 = vld [vmem:[#allocation5 + $0x858] sm:$0xff]  ;;  %v1050_v48 = vld [vmem:[#allocation5 + $0x7e0] sm:$0xff] }
 0x313   :  { %v1936_v51 = vpack.c.bf16 %v1053_v50, %v1050_v48  ;;  %v1307_v48 = vld [vmem:[#allocation5 + $0x7e8] sm:$0xff] }
 0x314   :  { %1855 = vmatpush1.bf16.msra.mxu0 %v1854_v53 }
 0x315   :  { %1857 = vmatprep.subr.bf16.mxu0 %v1856_v54 }
 0x318   :  { %1859 = vmatpush1.bf16.msra.mxu0 %v1858_v59  ;;  %v1007_v59 = vld [vmem:[#allocation5 + $0x68] sm:$0xff] }
 0x319   :  { %1861 = vmatprep.subr.bf16.mxu0 %v1860_v60  ;;  %v1010_v60 = vld [vmem:[#allocation5 + $0xf0] sm:$0xff] }
 0x31a   :  { %v1882_v61 = vpack.c.bf16 %v1010_v60, %v1007_v59 }
 0x31c   :  { %1863 = vmatpush1.bf16.msra.mxu0 %v1862_v1  ;;  %v1016_v1 = vld [vmem:[#allocation5 + $0x200] sm:$0xff] }
 0x31d   :  { %1865 = vmatprep.subr.bf16.mxu0 %v1864_v2  ;;  %v924_v2 = vld [vmem:[#allocation3 + $0x18] sm:$0xf]  ;;  %v1886_v4 = vpack.c.bf16 %v1016_v1, %v1013_v63 }
 0x320   :  { %1867 = vmatpush1.bf16.msra.mxu0 %v1866_v7  ;;  %v1019_v7 = vld [vmem:[#allocation5 + $0x288] sm:$0xff] }
 0x321   :  { %1869 = vmatprep.subr.bf16.mxu0 %v1868_v8  ;;  %v1022_v8 = vld [vmem:[#allocation5 + $0x310] sm:$0xff] }
 0x322   :  { %v1890_v10 = vpack.c.bf16 %v1022_v8, %v1019_v7  ;;  %v1198_v7 = vld [vmem:[#allocation3 + $0x1c] sm:$0xf] }
 0x324   :  { %1871 = vmatpush1.bf16.msra.mxu0 %v1870_v14  ;;  %v1028_v14 = vld [vmem:[#allocation5 + $0x420] sm:$0xff] }
 0x325   :  { %1873 = vmatprep.subr.bf16.mxu0 %v1872_v22  ;;  %v1894_v16 = vpack.c.bf16 %v1028_v14, %v1025_v13  ;;  %v1898_v22 = vpack.c.bf16 %v1034_v20, %v1031_v19  ;;  %v1290_v13 = vld [vmem:[#allocation5 + $0x328] sm:$0xff]  ;;  %v1294_v19 = vld [vmem:[#allocation5 + $0x438] sm:$0xff] }
 0x328   :  { %1875 = vmatpush1.bf16.msra.mxu0 %v1874_v26  ;;  %v1040_v26 = vld [vmem:[#allocation5 + $0x640] sm:$0xff] }
 0x329   :  { %1914 = vmatprep.subr.bf16.mxu0 %v2040_v43 }
 0x3de   :  { %v708_v28 = vpop.f32.mrb[14].mxu0 }
 0x3df   :  { %v709_v29 = vadd.f32 %v708_v28, %v637_v27  ;;  %v1581_v30 = vpop.f32.mrb[15].mxu0  ;;  %v1900_v27 = vpack.c.bf16 %v1033_v24, %v1030_v23  ;;  %v1902_v28 = vpack.c.bf16 %v1040_v26, %v1037_v25  ;;  %v1293_v23 = vld [vmem:[#allocation5 + $0x430] sm:$0xff]  ;;  %v1296_v24 = vld [vmem:[#allocation5 + $0x4c0] sm:$0xff]  ;;  %v1298_v25 = vld [vmem:[#allocation5 + $0x548] sm:$0xff] }
 0x3e0   :  { %v1039_v30 = vld [vmem:[#allocation5 + $0x638] sm:$0xff] }
 0x3e1   :  { %v712_v31 = vmul.f32 0.1, %v709_v29 }
 0x3e3   :  { %v713_v32 = vmax.f32 %v709_v29, %v712_v31  ;;  %v1036_v29 = vld [vmem:[#allocation5 + $0x5b0] sm:$0xff]  ;;  %v1043_v31 = vld [vmem:[#allocation5 + $0x6c8] sm:$0xff] }
 0x3e4   :  { %v1904_v34 = vpack.c.bf16 %v1039_v30, %v1036_v29  ;;  %v1297_v29 = vld [vmem:[#allocation5 + $0x540] sm:$0xff]  ;;  %v1300_v30 = vld [vmem:[#allocation5 + $0x5d0] sm:$0xff] }
 0x3e5   :  { %843 = vmatmul.mubr.f32.vlgmr.msra.gmra.mrb[12].mxu1 %v713_v32  ;;  %914 = vmatmul.mubr.f32.vlgmr.msra.gmra.mrb[16].mxu0 %v713_v32  ;;  %v1046_v32 = vld [vmem:[#allocation5 + $0x750] sm:$0xff] }
 0x3e6   :  { %1590 = vmatprep.mubr.msk.f32.mxu1 %vm2041_vm0, %v2128_v33  ;;  %1625 = vmatprep.mubr.msk.f32.mxu0 %vm2041_vm0, %v2128_v33  ;;  %v1906_v35 = vpack.c.bf16 %v1046_v32, %v1043_v31  ;;  %v1302_v31 = vld [vmem:[#allocation5 + $0x658] sm:$0xff] }
 0x3e7   :  { %1916 = vmatpush3.bf16.msra.mxu0 %v1915_v36  ;;  %v1042_v36 = vld [vmem:[#allocation5 + $0x6c0] sm:$0xff] }
 0x3e8   :  { %1917 = vmatprep.subr.bf16.mxu0 %v2040_v43 }
 0x3eb   :  { %1919 = vmatpush3.bf16.msra.mxu0 %v1918_v39  ;;  %v1908_v39 = vpack.c.bf16 %v1045_v37, %v1042_v36  ;;  %v1301_v36 = vld [vmem:[#allocation5 + $0x650] sm:$0xff]  ;;  %v1304_v37 = vld [vmem:[#allocation5 + $0x6e0] sm:$0xff] }
 0x3ec   :  { %1920 = vmatprep.subr.bf16.mxu0 %v2040_v43  ;;  %v1966_v40 = vpack.c.bf16 %v1306_v38, %v1304_v37 }
 0x3ef   :  { %1922 = vmatpush3.bf16.msra.mxu0 %v1921_v42  ;;  %v1049_v42 = vld [vmem:[#allocation5 + $0x7d8] sm:$0xff] }
 0x3f0   :  { %1923 = vmatprep.subr.bf16.mxu0 %v2040_v43  ;;  %v1910_v45 = vpack.c.bf16 %v1052_v44, %v1049_v42  ;;  %v1305_v42 = vld [vmem:[#allocation5 + $0x760] sm:$0xff]  ;;  %v1308_v44 = vld [vmem:[#allocation5 + $0x7f0] sm:$0xff] }
 0x3f3   :  { %1925 = vmatpush3.bf16.msra.mxu0 %v1924_v46  ;;  %v1048_v46 = vld [vmem:[#allocation5 + $0x7d0] sm:$0xff] }
 0x3f4   :  { %1926 = vmatprep.subr.bf16.mxu0 %v2040_v43 }
 0x3f7   :  { %1928 = vmatpush3.bf16.msra.mxu0 %v1927_v49  ;;  %v1912_v49 = vpack.c.bf16 %v1051_v47, %v1048_v46 }
 0x3f8   :  { %1929 = vmatprep.subr.bf16.mxu0 %v2040_v43 }
 0x3fb   :  { %1931 = vmatpush3.bf16.msra.mxu0 %v1930_v52  ;;  %v929_v52 = vld [vmem:[#allocation5 + $0x8c0] ss:$0 sm:$0xff] }
 0x3fc   :  { %1932 = vmatprep.subr.bf16.mxu0 %v2040_v43 }
 0x3ff   :  { %1934 = vmatpush3.bf16.msra.mxu0 %v1933_v41  ;;  %v1303_v41 = vld [vmem:[#allocation5 + $0x6d8] sm:$0xff] }
 0x400   :  { %1935 = vmatprep.subr.bf16.mxu0 %v2040_v43  ;;  %v1968_v46 = vpack.c.bf16 %v1305_v42, %v1303_v41 }
 0x403   :  { %1937 = vmatpush3.bf16.msra.mxu0 %v1936_v51 }
 0x4b8   :  { %v844_v53 = vpop.f32.mrb[12].mxu1  ;;  %v915_v54 = vpop.f32.mrb[16].mxu0 }
 0x4b9   :  { %920 = vst [vmem:[#allocation2] sm:$0xff] %v844_v53  ;;  %v846_v55 = vpop.f32.mrb[13].mxu1  ;;  %v917_v56 = vpop.f32.mrb[17].mxu0 }
 0x4ba   :  { %921 = vst [vmem:[#allocation2 + $0x8] sm:$0xff] %v846_v55  ;;  %v1877_v57 = vpack.c.bf16 %v846_v55, %v844_v53  ;;  %v1880_v58 = vpack.c.bf16 %v917_v56, %v915_v54 }
 0x4bc   :  { %1878 = vmatpush3.bf16.msra.mxu1 %v1877_v57 }
 0x4bd   :  { %1879 = vmatprep.subr.bf16.mxu1 %v2040_v43 }
 0x4c0   :  { %1881 = vmatpush3.bf16.msra.mxu1 %v1880_v58 }
 0x4c1   :  { %1883 = vmatprep.subr.bf16.mxu1 %v1882_v61  ;;  %v1280_v61 = vld [vmem:[#allocation5 + $0x80] sm:$0xff] }
 0x4c2   :  { %v1942_v1 = vpack.c.bf16 %v1282_v0, %v1280_v61 }
 0x4c3   :  { %1591 = vmatmul.mubr.msk.f32.vlgmr.msra.gmra.mrb[14].mxu1 %vm930_vm2, %v924_v2  ;;  %v1279_v2 = vld [vmem:[#allocation5 + $0x78] sm:$0xff] }
 0x4c4   :  { %1885 = vmatpush1.bf16.msra.mxu1 %v1884_v3  ;;  %1118 = vmatprep.mubr.f32.mxu1 %v2128_v33  ;;  %v1281_v3 = vld [vmem:[#allocation5 + $0x100] sm:$0xff] }
 0x4c5   :  { %1887 = vmatprep.subr.bf16.mxu1 %v1886_v4  ;;  %v1944_v8 = vpack.c.bf16 %v1281_v3, %v1279_v2 }
 0x4c8   :  { %1889 = vmatpush1.bf16.msra.mxu1 %v1888_v9  ;;  %v1946_v9 = vpack.c.bf16 %v1286_v6, %v1284_v5 }
 0x4c9   :  { %1891 = vmatprep.subr.bf16.mxu1 %v1890_v10  ;;  %v1283_v10 = vld [vmem:[#allocation5 + $0x188] sm:$0xff] }
 0x4ca   :  { %v1948_v14 = vpack.c.bf16 %v1285_v11, %v1283_v10 }
 0x4cc   :  { %1893 = vmatpush1.bf16.msra.mxu1 %v1892_v15  ;;  %v1950_v15 = vpack.c.bf16 %v1290_v13, %v1288_v12 }
 0x4cd   :  { %1895 = vmatprep.subr.bf16.mxu1 %v1894_v16  ;;  %v1287_v16 = vld [vmem:[#allocation5 + $0x298] sm:$0xff] }
 0x4ce   :  { %v1952_v20 = vpack.c.bf16 %v1289_v17, %v1287_v16 }
 0x4d0   :  { %1897 = vmatpush1.bf16.msra.mxu1 %v1896_v21  ;;  %v1954_v21 = vpack.c.bf16 %v1294_v19, %v1292_v18 }
 0x4d1   :  { %1899 = vmatprep.subr.bf16.mxu1 %v1898_v22  ;;  %v1291_v22 = vld [vmem:[#allocation5 + $0x3a8] sm:$0xff] }
 0x4d2   :  { %v1956_v26 = vpack.c.bf16 %v1293_v23, %v1291_v22 }
 0x4d4   :  { %1901 = vmatpush1.bf16.msra.mxu1 %v1900_v27  ;;  %v1958_v27 = vpack.c.bf16 %v1298_v25, %v1296_v24 }
 0x4d5   :  { %1903 = vmatprep.subr.bf16.mxu1 %v1902_v28  ;;  %v1295_v28 = vld [vmem:[#allocation5 + $0x4b8] sm:$0xff] }
 0x4d6   :  { %v1960_v32 = vpack.c.bf16 %v1297_v29, %v1295_v28 }
 0x4d8   :  { %1905 = vmatpush1.bf16.msra.mxu1 %v1904_v34  ;;  %v1962_v34 = vpack.c.bf16 %v1302_v31, %v1300_v30 }
 0x4d9   :  { %1907 = vmatprep.subr.bf16.mxu1 %v1906_v35  ;;  %v1299_v35 = vld [vmem:[#allocation5 + $0x5c8] sm:$0xff] }
 0x4dc   :  { %1909 = vmatpush1.bf16.msra.mxu1 %v1908_v39  ;;  %v1964_v39 = vpack.c.bf16 %v1301_v36, %v1299_v35 }
 0x4dd   :  { %1911 = vmatprep.subr.bf16.mxu1 %v1910_v45  ;;  %v1310_v45 = vld [vmem:[#allocation5 + $0x878] sm:$0xff] }
 0x4de   :  { %v1970_v47 = vpack.c.bf16 %v1310_v45, %v1308_v44 }
 0x4e0   :  { %1913 = vmatpush1.bf16.msra.mxu1 %v1912_v49  ;;  %v1309_v49 = vld [vmem:[#allocation5 + $0x870] sm:$0xff] }
 0x4e1   :  { %1938 = vmatprep.subr.bf16.mxu1 %v2040_v43  ;;  %v1972_v50 = vpack.c.bf16 %v1309_v49, %v1307_v48 }
 0x596   :  { %v1000_v53 = vpop.f32.mrb[14].mxu1 }
 0x597   :  { %v1001_v54 = vadd.f32 %v1000_v53, %v929_v52  ;;  %v1592_v55 = vpop.f32.mrb[15].mxu1 }
 0x598   :  { %v1384_v55 = vld [vmem:[#allocation3 + $0x20] sm:$0x3] }
 0x599   :  { %v1004_v56 = vmul.f32 0.1, %v1001_v54 }
 0x59b   :  { %v2144_v57 = vmax.f32 %v1001_v54, %v1004_v56 }
 0x59d   :  { %1119 = vmatmul.mubr.f32.vlgmr.msra.gmra.mrb[16].mxu1 %v2144_v57  ;;  %1626 = vmatmul.mubr.f32.vlgmr.msra.gmra.mrb[18].mxu0 %v2144_v57 }
 0x59e   :  { %1632 = vmatprep.mubr.msk.f32.mxu1 %vm2041_vm0, %v2128_v33 }
 0x670   :  { %v1120_v58 = vpop.f32.mrb[16].mxu1  ;;  %v1191_v59 = vpop.f32.mrb[18].mxu0 }
 0x671   :  { %1195 = vst [vmem:[#allocation2] sm:$0xf] %v1120_v58  ;;  %1197 = vst [vmem:[#allocation2 + $0x8] sm:$0xf] %v1191_v59  ;;  %v1122_v60 = vpop.f32.mrb[17].mxu1  ;;  %v1627_v43 = vpop.f32.mrb[19].mxu0 }
 0x672   :  { %1196 = vst [vmem:[#allocation2 + $0x4] sm:$0xf] %v1122_v60 }
 0x678   :  { %v1200_v62 = vld [vmem:[#allocation2 + $0x8] sm:$0xf] }
 0x679   :  { %v1199_v63 = vld [vmem:[#allocation2] sm:$0xff] }
 0x67a   :  { %v1939_v4 = vpack.c.bf16 %v1200_v62, %v1199_v63 }
 0x67c   :  { %1941 = vmatpush3.bf16.msk.msra.mxu1 %vm1940_vm5, %v1939_v4 }
 0x67d   :  { %1943 = vmatprep.subr.bf16.mxu1 %v1942_v1 }
 0x67f   :  { %1633 = vmatmul.mubr.msk.f32.vlgmr.msra.gmra.mrb[18].mxu1 %vm1201_vm6, %v1198_v7 }
 0x680   :  { %1945 = vmatpush1.bf16.msra.mxu1 %v1944_v8  ;;  %1375 = vmatprep.mubr.f32.mxu1 %v2128_v33 }
 0x681   :  { %1947 = vmatprep.subr.bf16.mxu1 %v1946_v9 }
 0x684   :  { %1949 = vmatpush1.bf16.msra.mxu1 %v1948_v14 }
 0x685   :  { %1951 = vmatprep.subr.bf16.mxu1 %v1950_v15 }
 0x688   :  { %1953 = vmatpush1.bf16.msra.mxu1 %v1952_v20 }
 0x689   :  { %1955 = vmatprep.subr.bf16.mxu1 %v1954_v21 }
 0x68c   :  { %1957 = vmatpush1.bf16.msra.mxu1 %v1956_v26 }
 0x68d   :  { %1959 = vmatprep.subr.bf16.mxu1 %v1958_v27 }
 0x690   :  { %1961 = vmatpush1.bf16.msra.mxu1 %v1960_v32 }
 0x691   :  { %1963 = vmatprep.subr.bf16.mxu1 %v1962_v34 }
 0x694   :  { %1965 = vmatpush1.bf16.msra.mxu1 %v1964_v39 }
 0x695   :  { %1967 = vmatprep.subr.bf16.mxu1 %v1966_v40 }
 0x698   :  { %1969 = vmatpush1.bf16.msra.mxu1 %v1968_v46 }
 0x699   :  { %1971 = vmatprep.subr.bf16.mxu1 %v1970_v47 }
 0x69c   :  { %1973 = vmatpush1.bf16.msra.mxu1 %v1972_v50 }
 0x69d   :  { %1635 = vmatprep.subr.mxu1 %v2128_v33 }
 0x69f   :  { %1376 = vmatmul.mubr.f32.vlgmr.msra.gmra.mrb[20].mxu1 %v2144_v57 }
 0x6a0   :  { %1637 = vmatprep.mubr.msk.f32.mxu1 %vm2041_vm0, %v2128_v33 }
 0x752   :  { %v1275_v51 = vpop.f32.mrb[18].mxu1 }
 0x753   :  { %1461 = vst [vmem:[%s2164_s3] sm:$0xf] %v1275_v51  ;;  %v1634_v52 = vpop.f32.mrb[19].mxu1 }
 0x772   :  { %v1377_v53 = vpop.f32.mrb[20].mxu1 }
 0x773   :  { %1382 = vst [vmem:[#allocation2] sm:$0xf] %v1377_v53  ;;  %v1379_v54 = vpop.f32.mrb[21].mxu1 }
 0x774   :  { %1383 = vst [vmem:[#allocation2 + $0x4] sm:$0xf] %v1379_v54 }
 0x77b   :  { %v1385_v56 = vld [vmem:[#allocation2] sm:$0xff] }
 0x77c   :  { %1636 = vmatpush3.msra.mxu1 %v1385_v56 }
 0x77d   :  { %1638 = vmatmul.mubr.msk.f32.vlgmr.msra.gmra.mrb[22].mxu1 %vm1386_vm7, %v1384_v55 }
 0x850   :  { %v1456_v58 = vpop.f32.mrb[22].mxu1 }
 0x851   :  { %1462 = vst [vmem:[%s2164_s3 + $0x4] sm:$0x3] %v1456_v58  ;;  %v1639_v33 = vpop.f32.mrb[23].mxu1 }
 0x852   :  { %1467 = vsyncpa [#allocation4], 1 }
 0x853   :  { %1468 = vsyncpa [#allocation6], 1 }

</bundles_post_ra>
